<compile_context>
chip_gen: v5e
topology: v5e:2x2
jax: 0.10.0
libtpu: 0.0.40
codegen_flags: <defaults>
</compile_context>

<pallas_src>
import functools

import jax
import jax.numpy as jnp
from jax import lax
from jax.experimental import pallas as pl
from jax.experimental.pallas import tpu as pltpu


# ----------------------------------------------------------------------------
# Fused bottleneck kernel
# ----------------------------------------------------------------------------

def _bottleneck_kernel(x_hbm, w1_ref, s1_ref, b1_ref, w2_ref, s2_ref, b2_ref,
                       w3_ref, s3_ref, b3_ref, o_ref, xbuf, sems,
                       *, H, W, TH, Cin, Cmid, Cout):
    n = pl.program_id(0)
    i = pl.program_id(1)
    row0 = i * TH                         # first output row (global)
    total = (TH + 2) * W                  # rows incl. the 1-row halo
    M2 = TH * W

    # ---- manual halo'd x DMA: rows [row0-1, row0+TH] (clamped) --> VMEM -----
    top = jnp.maximum(row0 - 1, 0)
    bot = jnp.minimum(row0 + TH, H - 1)
    cp_main = pltpu.make_async_copy(x_hbm.at[n, pl.ds(row0, TH)],
                                    xbuf.at[pl.ds(1, TH)], sems.at[0])
    cp_top = pltpu.make_async_copy(x_hbm.at[n, pl.ds(top, 1)],
                                   xbuf.at[pl.ds(0, 1)], sems.at[1])
    cp_bot = pltpu.make_async_copy(x_hbm.at[n, pl.ds(bot, 1)],
                                   xbuf.at[pl.ds(TH + 1, 1)], sems.at[2])
    cp_main.start(); cp_top.start(); cp_bot.start()
    cp_main.wait(); cp_top.wait(); cp_bot.wait()

    # ---- conv1 (1x1) + bn1 + relu over all TH+2 rows (f32 epilogue) ---------
    xin = xbuf[...].reshape(total, Cin)                        # bf16
    h1 = jnp.dot(xin, w1_ref[...], preferred_element_type=jnp.float32)
    h1 = jnp.maximum(h1 * s1_ref[...] + b1_ref[...], 0.0)      # f32
    h1_3d = h1.reshape(TH + 2, W, Cmid)

    # ---- conv2 (3x3, pad=1) + bn2 + relu: 3 rolls -> 9 masked taps ----------
    # Column shift handled by a sublane roll along W; row shift by a (cheap)
    # leading-dim slice into the halo'd h1; out-of-image taps masked to zero
    # (matches PyTorch's zero padding of the conv2 *input*, i.e. of h1).
    g_row = lax.broadcasted_iota(jnp.int32, (TH, 1, 1), 0) + row0
    col = lax.broadcasted_iota(jnp.int32, (1, W, 1), 1)
    rolled = {dw: (h1_3d if dw == 0
                   else pltpu.roll(h1_3d, (-dw) % W, axis=1))
              for dw in (-1, 0, 1)}

    acc = jnp.zeros((M2, Cmid), jnp.float32)
    for kh in range(3):
        dh = kh - 1
        row_ok = (g_row + dh >= 0) & (g_row + dh < H)          # (TH,1,1)
        for kw in range(3):
            dw = kw - 1
            ok = row_ok & (col + dw >= 0) & (col + dw < W)     # (TH,W,1)
            tap = rolled[dw][kh:kh + TH]                       # (TH,W,Cmid) f32
            tap = jnp.where(ok, tap, 0.0).reshape(M2, Cmid).astype(jnp.bfloat16)
            acc = acc + jnp.dot(tap, w2_ref[kh, kw],
                                preferred_element_type=jnp.float32)
    h2 = jnp.maximum(acc * s2_ref[...] + b2_ref[...], 0.0).astype(jnp.bfloat16)

    # ---- conv3 (1x1) + bn3 + residual add + relu ----------------------------
    ident = xbuf[pl.ds(1, TH)].astype(jnp.float32).reshape(M2, Cin)
    out = jnp.dot(h2, w3_ref[...], preferred_element_type=jnp.float32)
    out = jnp.maximum(out * s3_ref[...] + b3_ref[...] + ident, 0.0)
    o_ref[...] = out.reshape(1, TH, W, Cout).astype(o_ref.dtype)


# ----------------------------------------------------------------------------
# Wrapper
# ----------------------------------------------------------------------------

def _pick_block_h(H, target):
    for th in range(min(target, H), 0, -1):
        if H % th == 0:
            return th
    return H


def bottleneck_forward(x_nchw, p, *, block_h=8):
    """Bottleneck forward. x_nchw: (N, Cin, H, W) f32 -> (N, 4*planes, H, W)."""
    N, Cin, H, W = x_nchw.shape
    Cmid = p["w1"].shape[1]
    Cout = p["w3"].shape[1]
    assert Cout == Cin, "downsample=None requires inplanes == planes * 4"
    TH = _pick_block_h(H, block_h)

    # NHWC + bf16 cast fused into the (unavoidable) boundary transpose.
    x = jnp.transpose(x_nchw, (0, 2, 3, 1)).astype(jnp.bfloat16)

    w1 = p["w1"].astype(jnp.bfloat16)                  # (Cin, Cmid)
    w2 = p["w2"].astype(jnp.bfloat16)                  # (3, 3, Cmid, Cmid) HWIO
    w3 = p["w3"].astype(jnp.bfloat16)                  # (Cmid, Cout)
    s1 = p["s1"].reshape(1, Cmid).astype(jnp.float32)
    b1 = p["b1"].reshape(1, Cmid).astype(jnp.float32)
    s2 = p["s2"].reshape(1, Cmid).astype(jnp.float32)
    b2 = p["b2"].reshape(1, Cmid).astype(jnp.float32)
    s3 = p["s3"].reshape(1, Cout).astype(jnp.float32)
    b3 = p["b3"].reshape(1, Cout).astype(jnp.float32)

    kernel = functools.partial(_bottleneck_kernel, H=H, W=W, TH=TH,
                               Cin=Cin, Cmid=Cmid, Cout=Cout)
    rep2 = lambda n, i: (0, 0)

    out_nhwc = pl.pallas_call(
        kernel,
        out_shape=jax.ShapeDtypeStruct((N, H, W, Cout), jnp.float32),
        grid=(N, H // TH),
        in_specs=[
            pl.BlockSpec(memory_space=pl.ANY),                  # x: manual halo DMA
            pl.BlockSpec((Cin, Cmid), rep2),                    # w1
            pl.BlockSpec((1, Cmid), rep2),                      # s1
            pl.BlockSpec((1, Cmid), rep2),                      # b1
            pl.BlockSpec((3, 3, Cmid, Cmid), lambda n, i: (0, 0, 0, 0)),  # w2
            pl.BlockSpec((1, Cmid), rep2),                      # s2
            pl.BlockSpec((1, Cmid), rep2),                      # b2
            pl.BlockSpec((Cmid, Cout), rep2),                   # w3
            pl.BlockSpec((1, Cout), rep2),                      # s3
            pl.BlockSpec((1, Cout), rep2),                      # b3
        ],
        out_specs=pl.BlockSpec((1, TH, W, Cout), lambda n, i: (n, i, 0, 0)),
        scratch_shapes=[
            pltpu.VMEM((TH + 2, W, Cin), jnp.bfloat16),         # halo'd x tile
            pltpu.SemaphoreType.DMA((3,)),
        ],
        compiler_params=pltpu.CompilerParams(
            dimension_semantics=("parallel", "parallel")),      # 2-TC friendly
    )(x, w1, s1, b1, w2, s2, b2, w3, s3, b3)

    return jnp.transpose(out_nhwc, (0, 3, 1, 2)).astype(x_nchw.dtype)


# ----------------------------------------------------------------------------
# Deterministic parameter init (matches PyTorch Bottleneck(inplanes, planes))
# ----------------------------------------------------------------------------

def init_params(key, inplanes, planes, base_width=64, groups=1):
    width = int(planes * (base_width / 64.0)) * groups
    out_ch = planes * 4  # expansion = 4
    keys = jax.random.split(key, 15)

    def bn_fold(k0, k1, k2, k3, c):
        gamma = 1.0 + 0.1 * jax.random.normal(k0, (c,), jnp.float32)
        beta = 0.1 * jax.random.normal(k1, (c,), jnp.float32)
        mean = 0.1 * jax.random.normal(k2, (c,), jnp.float32)
        var = jnp.abs(jax.random.normal(k3, (c,), jnp.float32)) * 0.5 + 0.5
        scale = gamma / jnp.sqrt(var + 1e-5)
        bias = beta - mean * scale
        return scale, bias

    # PyTorch OIHW weights (kept for the reference), plus kernel layouts.
    w1_t = 0.1 * jax.random.normal(keys[0], (width, inplanes, 1, 1), jnp.float32)
    w2_t = 0.1 * jax.random.normal(keys[1], (width, width, 3, 3), jnp.float32)
    w3_t = 0.1 * jax.random.normal(keys[2], (out_ch, width, 1, 1), jnp.float32)

    s1, b1 = bn_fold(keys[3], keys[4], keys[5], keys[6], width)
    s2, b2 = bn_fold(keys[7], keys[8], keys[9], keys[10], width)
    s3, b3 = bn_fold(keys[11], keys[12], keys[13], keys[14], out_ch)

    return {
        "w1": jnp.transpose(w1_t[:, :, 0, 0], (1, 0)),   # (Cin, width)
        "w2": jnp.transpose(w2_t, (2, 3, 1, 0)),          # (3,3,Cin,Cout) HWIO
        "w3": jnp.transpose(w3_t[:, :, 0, 0], (1, 0)),    # (width, out_ch)
        "s1": s1, "b1": b1, "s2": s2, "b2": b2, "s3": s3, "b3": b3,
        "w1_t": w1_t, "w2_t": w2_t, "w3_t": w3_t,
    }


# ----------------------------------------------------------------------------
# Plain-JAX f32 reference (same semantics as the PyTorch module, eval mode)
# ----------------------------------------------------------------------------

def reference_forward(x, p):
    def conv(x, w, pad):
        return lax.conv_general_dilated(
            x, w, (1, 1), [(pad, pad), (pad, pad)],
            dimension_numbers=("NCHW", "OIHW", "NCHW"))

    def bn(x, s, b):
        return x * s[None, :, None, None] + b[None, :, None, None]

    out = jnp.maximum(bn(conv(x, p["w1_t"], 0), p["s1"], p["b1"]), 0.0)
    out = jnp.maximum(bn(conv(out, p["w2_t"], 1), p["s2"], p["b2"]), 0.0)
    out = bn(conv(out, p["w3_t"], 0), p["s3"], p["b3"])
    return jnp.maximum(out + x, 0.0)


# ----------------------------------------------------------------------------

if __name__ == "__main__":
    key = jax.random.PRNGKey(0)
    k_x, k_p = jax.random.split(key)

    # Bottleneck(inplanes=16, planes=4): width=4, out_channels=16 (==inplanes,
    # so downsample=None and the residual add is valid).
    N, inplanes, planes, H, W = 2, 16, 4, 16, 16
    x = jax.random.normal(k_x, (N, inplanes, H, W), jnp.float32)
    params = init_params(k_p, inplanes, planes)

    fwd = jax.jit(functools.partial(bottleneck_forward, block_h=8))
    out = jax.block_until_ready(fwd(x, params))

    ref = reference_forward(x, params)
    assert out.shape == (N, planes * 4, H, W), out.shape
    max_err = float(jnp.max(jnp.abs(out - ref)))
    # bf16 MXU inputs (incl. the bf16 identity) vs. an f32 reference.
    assert max_err < 5e-2, max_err
    print("KERNEL_OK")
</pallas_src>

<mosaic_0001>
module attributes {stable_mosaic.version = 11 : i64} {
  func.func @_bottleneck_kernel(%arg0: i32, %arg1: i32, %arg2: memref<2x16x16x16xbf16, #tpu.memory_space<any>>, %arg3: memref<16x4xbf16, #tpu.memory_space<vmem>>, %arg4: memref<1x4xf32, #tpu.memory_space<vmem>>, %arg5: memref<1x4xf32, #tpu.memory_space<vmem>>, %arg6: memref<3x3x4x4xbf16, #tpu.memory_space<vmem>>, %arg7: memref<1x4xf32, #tpu.memory_space<vmem>>, %arg8: memref<1x4xf32, #tpu.memory_space<vmem>>, %arg9: memref<4x16xbf16, #tpu.memory_space<vmem>>, %arg10: memref<1x16xf32, #tpu.memory_space<vmem>>, %arg11: memref<1x16xf32, #tpu.memory_space<vmem>>, %arg12: memref<1x8x16x16xf32, #tpu.memory_space<vmem>>, %arg13: memref<10x16x16xbf16, #tpu.memory_space<vmem>>, %arg14: memref<3x!tpu.dma_semaphore, #tpu.memory_space<semaphore_mem>>) attributes {dimension_semantics = [#tpu.dimension_semantics<parallel>, #tpu.dimension_semantics<parallel>], iteration_bounds = array<i64: 2, 2>, scalar_prefetch = 0 : i64, scratch_operands = 2 : i64, tpu.core_type = #tpu.core_type<tc>, window_params = [{}, {pipeline_mode = #tpu.pipeline_mode<synchronous>, transform_indices = @transform_1, window_bounds = array<i64: 16, 4>}, {pipeline_mode = #tpu.pipeline_mode<synchronous>, transform_indices = @transform_2, window_bounds = array<i64: 1, 4>}, {pipeline_mode = #tpu.pipeline_mode<synchronous>, transform_indices = @transform_3, window_bounds = array<i64: 1, 4>}, {pipeline_mode = #tpu.pipeline_mode<synchronous>, transform_indices = @transform_4, window_bounds = array<i64: 3, 3, 4, 4>}, {pipeline_mode = #tpu.pipeline_mode<synchronous>, transform_indices = @transform_5, window_bounds = array<i64: 1, 4>}, {pipeline_mode = #tpu.pipeline_mode<synchronous>, transform_indices = @transform_6, window_bounds = array<i64: 1, 4>}, {pipeline_mode = #tpu.pipeline_mode<synchronous>, transform_indices = @transform_7, window_bounds = array<i64: 4, 16>}, {pipeline_mode = #tpu.pipeline_mode<synchronous>, transform_indices = @transform_8, window_bounds = array<i64: 1, 16>}, {pipeline_mode = #tpu.pipeline_mode<synchronous>, transform_indices = @transform_9, window_bounds = array<i64: 1, 16>}, {transform_indices = @transform_10, window_bounds = array<i64: 1, 8, 16, 16>}]} {
    %c8_i32 = arith.constant 8 : i32
    %0 = arith.muli %arg1, %c8_i32 : i32
    %c1_i32 = arith.constant 1 : i32
    %1 = arith.subi %0, %c1_i32 : i32
    %c0_i32 = arith.constant 0 : i32
    %2 = arith.maxsi %1, %c0_i32 : i32
    %c8_i32_0 = arith.constant 8 : i32
    %3 = arith.addi %0, %c8_i32_0 : i32
    %c15_i32 = arith.constant 15 : i32
    %4 = arith.minsi %3, %c15_i32 : i32
    %c0_i32_1 = arith.constant 0 : i32
    %c0_i32_2 = arith.constant 0 : i32
    %c0_i32_3 = arith.constant 0 : i32
    %5 = tpu.memref_slice %arg2[%arg0, %0, %c0_i32_2, %c0_i32_3] : memref<2x16x16x16xbf16, #tpu.memory_space<any>> -> memref<1x8x16x16xbf16, #tpu.memory_space<any>>
    %6 = tpu.memref_squeeze %5 : memref<1x8x16x16xbf16, #tpu.memory_space<any>> -> memref<8x16x16xbf16, #tpu.memory_space<any>>
    %c1_i32_4 = arith.constant 1 : i32
    %c0_i32_5 = arith.constant 0 : i32
    %c0_i32_6 = arith.constant 0 : i32
    %7 = tpu.memref_slice %arg13[%c1_i32_4, %c0_i32_5, %c0_i32_6] : memref<10x16x16xbf16, #tpu.memory_space<vmem>> -> memref<8x16x16xbf16, #tpu.memory_space<vmem>>
    %8 = tpu.memref_slice %arg14[%c0_i32_1] : memref<3x!tpu.dma_semaphore, #tpu.memory_space<semaphore_mem>> -> memref<1x!tpu.dma_semaphore, #tpu.memory_space<semaphore_mem>>
    %9 = tpu.memref_squeeze %8 : memref<1x!tpu.dma_semaphore, #tpu.memory_space<semaphore_mem>> -> memref<!tpu.dma_semaphore, #tpu.memory_space<semaphore_mem>>
    tpu.enqueue_dma source(%6 : memref<8x16x16xbf16, #tpu.memory_space<any>>) target(%7 : memref<8x16x16xbf16, #tpu.memory_space<vmem>>) target_semaphore(%9 : memref<!tpu.dma_semaphore, #tpu.memory_space<semaphore_mem>>)
    %c1_i32_7 = arith.constant 1 : i32
    %c0_i32_8 = arith.constant 0 : i32
    %c0_i32_9 = arith.constant 0 : i32
    %10 = tpu.memref_slice %arg2[%arg0, %2, %c0_i32_8, %c0_i32_9] : memref<2x16x16x16xbf16, #tpu.memory_space<any>> -> memref<1x1x16x16xbf16, #tpu.memory_space<any>>
    %11 = tpu.memref_squeeze %10 : memref<1x1x16x16xbf16, #tpu.memory_space<any>> -> memref<1x16x16xbf16, #tpu.memory_space<any>>
    %c0_i32_10 = arith.constant 0 : i32
    %c0_i32_11 = arith.constant 0 : i32
    %c0_i32_12 = arith.constant 0 : i32
    %12 = tpu.memref_slice %arg13[%c0_i32_10, %c0_i32_11, %c0_i32_12] : memref<10x16x16xbf16, #tpu.memory_space<vmem>> -> memref<1x16x16xbf16, #tpu.memory_space<vmem>>
    %13 = tpu.memref_slice %arg14[%c1_i32_7] : memref<3x!tpu.dma_semaphore, #tpu.memory_space<semaphore_mem>> -> memref<1x!tpu.dma_semaphore, #tpu.memory_space<semaphore_mem>>
    %14 = tpu.memref_squeeze %13 : memref<1x!tpu.dma_semaphore, #tpu.memory_space<semaphore_mem>> -> memref<!tpu.dma_semaphore, #tpu.memory_space<semaphore_mem>>
    tpu.enqueue_dma source(%11 : memref<1x16x16xbf16, #tpu.memory_space<any>>) target(%12 : memref<1x16x16xbf16, #tpu.memory_space<vmem>>) target_semaphore(%14 : memref<!tpu.dma_semaphore, #tpu.memory_space<semaphore_mem>>)
    %c2_i32 = arith.constant 2 : i32
    %c0_i32_13 = arith.constant 0 : i32
    %c0_i32_14 = arith.constant 0 : i32
    %15 = tpu.memref_slice %arg2[%arg0, %4, %c0_i32_13, %c0_i32_14] : memref<2x16x16x16xbf16, #tpu.memory_space<any>> -> memref<1x1x16x16xbf16, #tpu.memory_space<any>>
    %16 = tpu.memref_squeeze %15 : memref<1x1x16x16xbf16, #tpu.memory_space<any>> -> memref<1x16x16xbf16, #tpu.memory_space<any>>
    %c9_i32 = arith.constant 9 : i32
    %c0_i32_15 = arith.constant 0 : i32
    %c0_i32_16 = arith.constant 0 : i32
    %17 = tpu.memref_slice %arg13[%c9_i32, %c0_i32_15, %c0_i32_16] : memref<10x16x16xbf16, #tpu.memory_space<vmem>> -> memref<1x16x16xbf16, #tpu.memory_space<vmem>>
    %18 = tpu.memref_slice %arg14[%c2_i32] : memref<3x!tpu.dma_semaphore, #tpu.memory_space<semaphore_mem>> -> memref<1x!tpu.dma_semaphore, #tpu.memory_space<semaphore_mem>>
    %19 = tpu.memref_squeeze %18 : memref<1x!tpu.dma_semaphore, #tpu.memory_space<semaphore_mem>> -> memref<!tpu.dma_semaphore, #tpu.memory_space<semaphore_mem>>
    tpu.enqueue_dma source(%16 : memref<1x16x16xbf16, #tpu.memory_space<any>>) target(%17 : memref<1x16x16xbf16, #tpu.memory_space<vmem>>) target_semaphore(%19 : memref<!tpu.dma_semaphore, #tpu.memory_space<semaphore_mem>>)
    %c0_i32_17 = arith.constant 0 : i32
    %c0_i32_18 = arith.constant 0 : i32
    %c0_i32_19 = arith.constant 0 : i32
    %20 = tpu.memref_slice %arg2[%arg0, %0, %c0_i32_18, %c0_i32_19] : memref<2x16x16x16xbf16, #tpu.memory_space<any>> -> memref<1x8x16x16xbf16, #tpu.memory_space<any>>
    %21 = tpu.memref_squeeze %20 : memref<1x8x16x16xbf16, #tpu.memory_space<any>> -> memref<8x16x16xbf16, #tpu.memory_space<any>>
    %c1_i32_20 = arith.constant 1 : i32
    %c0_i32_21 = arith.constant 0 : i32
    %c0_i32_22 = arith.constant 0 : i32
    %22 = tpu.memref_slice %arg13[%c1_i32_20, %c0_i32_21, %c0_i32_22] : memref<10x16x16xbf16, #tpu.memory_space<vmem>> -> memref<8x16x16xbf16, #tpu.memory_space<vmem>>
    %23 = tpu.memref_slice %arg14[%c0_i32_17] : memref<3x!tpu.dma_semaphore, #tpu.memory_space<semaphore_mem>> -> memref<1x!tpu.dma_semaphore, #tpu.memory_space<semaphore_mem>>
    %24 = tpu.memref_squeeze %23 : memref<1x!tpu.dma_semaphore, #tpu.memory_space<semaphore_mem>> -> memref<!tpu.dma_semaphore, #tpu.memory_space<semaphore_mem>>
    tpu.wait_dma2 semaphore(%24 : memref<!tpu.dma_semaphore, #tpu.memory_space<semaphore_mem>>) src(%21 : memref<8x16x16xbf16, #tpu.memory_space<any>>) dst(%22 : memref<8x16x16xbf16, #tpu.memory_space<vmem>>)
    %c1_i32_23 = arith.constant 1 : i32
    %c0_i32_24 = arith.constant 0 : i32
    %c0_i32_25 = arith.constant 0 : i32
    %25 = tpu.memref_slice %arg2[%arg0, %2, %c0_i32_24, %c0_i32_25] : memref<2x16x16x16xbf16, #tpu.memory_space<any>> -> memref<1x1x16x16xbf16, #tpu.memory_space<any>>
    %26 = tpu.memref_squeeze %25 : memref<1x1x16x16xbf16, #tpu.memory_space<any>> -> memref<1x16x16xbf16, #tpu.memory_space<any>>
    %c0_i32_26 = arith.constant 0 : i32
    %c0_i32_27 = arith.constant 0 : i32
    %c0_i32_28 = arith.constant 0 : i32
    %27 = tpu.memref_slice %arg13[%c0_i32_26, %c0_i32_27, %c0_i32_28] : memref<10x16x16xbf16, #tpu.memory_space<vmem>> -> memref<1x16x16xbf16, #tpu.memory_space<vmem>>
    %28 = tpu.memref_slice %arg14[%c1_i32_23] : memref<3x!tpu.dma_semaphore, #tpu.memory_space<semaphore_mem>> -> memref<1x!tpu.dma_semaphore, #tpu.memory_space<semaphore_mem>>
    %29 = tpu.memref_squeeze %28 : memref<1x!tpu.dma_semaphore, #tpu.memory_space<semaphore_mem>> -> memref<!tpu.dma_semaphore, #tpu.memory_space<semaphore_mem>>
    tpu.wait_dma2 semaphore(%29 : memref<!tpu.dma_semaphore, #tpu.memory_space<semaphore_mem>>) src(%26 : memref<1x16x16xbf16, #tpu.memory_space<any>>) dst(%27 : memref<1x16x16xbf16, #tpu.memory_space<vmem>>)
    %c2_i32_29 = arith.constant 2 : i32
    %c0_i32_30 = arith.constant 0 : i32
    %c0_i32_31 = arith.constant 0 : i32
    %30 = tpu.memref_slice %arg2[%arg0, %4, %c0_i32_30, %c0_i32_31] : memref<2x16x16x16xbf16, #tpu.memory_space<any>> -> memref<1x1x16x16xbf16, #tpu.memory_space<any>>
    %31 = tpu.memref_squeeze %30 : memref<1x1x16x16xbf16, #tpu.memory_space<any>> -> memref<1x16x16xbf16, #tpu.memory_space<any>>
    %c9_i32_32 = arith.constant 9 : i32
    %c0_i32_33 = arith.constant 0 : i32
    %c0_i32_34 = arith.constant 0 : i32
    %32 = tpu.memref_slice %arg13[%c9_i32_32, %c0_i32_33, %c0_i32_34] : memref<10x16x16xbf16, #tpu.memory_space<vmem>> -> memref<1x16x16xbf16, #tpu.memory_space<vmem>>
    %33 = tpu.memref_slice %arg14[%c2_i32_29] : memref<3x!tpu.dma_semaphore, #tpu.memory_space<semaphore_mem>> -> memref<1x!tpu.dma_semaphore, #tpu.memory_space<semaphore_mem>>
    %34 = tpu.memref_squeeze %33 : memref<1x!tpu.dma_semaphore, #tpu.memory_space<semaphore_mem>> -> memref<!tpu.dma_semaphore, #tpu.memory_space<semaphore_mem>>
    tpu.wait_dma2 semaphore(%34 : memref<!tpu.dma_semaphore, #tpu.memory_space<semaphore_mem>>) src(%31 : memref<1x16x16xbf16, #tpu.memory_space<any>>) dst(%32 : memref<1x16x16xbf16, #tpu.memory_space<vmem>>)
    %c0 = arith.constant 0 : index
    %c0_35 = arith.constant 0 : index
    %c0_36 = arith.constant 0 : index
    %35 = vector.load %arg13[%c0, %c0_35, %c0_36] : memref<10x16x16xbf16, #tpu.memory_space<vmem>>, vector<10x16x16xbf16>
    %36 = vector.shape_cast %35 : vector<10x16x16xbf16> to vector<160x16xbf16>
    %c0_37 = arith.constant 0 : index
    %c0_38 = arith.constant 0 : index
    %37 = vector.load %arg3[%c0_37, %c0_38] : memref<16x4xbf16, #tpu.memory_space<vmem>>, vector<16x4xbf16>
    %cst = arith.constant dense<0.000000e+00> : vector<160x4xf32>
    %38 = tpu.matmul %36, %37, %cst {dimension_numbers = #tpu.dot_dimension_numbers<[1], [0], [0], [1], [0, 0, 1, 1], [], []>} : vector<160x16xbf16>, vector<16x4xbf16>, vector<160x4xf32> -> vector<160x4xf32>
    %c0_39 = arith.constant 0 : index
    %c0_40 = arith.constant 0 : index
    %39 = vector.load %arg4[%c0_39, %c0_40] : memref<1x4xf32, #tpu.memory_space<vmem>>, vector<1x4xf32>
    %40 = vector.broadcast %39 : vector<1x4xf32> to vector<160x4xf32>
    %41 = arith.mulf %38, %40 : vector<160x4xf32>
    %c0_41 = arith.constant 0 : index
    %c0_42 = arith.constant 0 : index
    %42 = vector.load %arg5[%c0_41, %c0_42] : memref<1x4xf32, #tpu.memory_space<vmem>>, vector<1x4xf32>
    %43 = vector.broadcast %42 : vector<1x4xf32> to vector<160x4xf32>
    %44 = arith.addf %41, %43 : vector<160x4xf32>
    %cst_43 = arith.constant 0.000000e+00 : f32
    %45 = vector.broadcast %cst_43 : f32 to vector<160x4xf32>
    %46 = arith.maximumf %44, %45 : vector<160x4xf32>
    %47 = vector.shape_cast %46 : vector<160x4xf32> to vector<10x16x4xf32>
    %48 = tpu.iota {dimensions = array<i32: 0>} : vector<8x1x1xi32>
    %49 = vector.broadcast %0 : i32 to vector<8x1x1xi32>
    %50 = arith.addi %48, %49 : vector<8x1x1xi32>
    %51 = tpu.iota {dimensions = array<i32: 1>} : vector<1x16x1xi32>
    %c1_i32_44 = arith.constant 1 : i32
    %52 = tpu.dynamic_rotate %47 by %c1_i32_44 dim 1 : vector<10x16x4xf32>, i32 -> vector<10x16x4xf32>
    %c15_i32_45 = arith.constant 15 : i32
    %53 = tpu.dynamic_rotate %47 by %c15_i32_45 dim 1 : vector<10x16x4xf32>, i32 -> vector<10x16x4xf32>
    %cst_46 = arith.constant 0.000000e+00 : f32
    %54 = vector.broadcast %cst_46 : f32 to vector<128x4xf32>
    %c-1_i32 = arith.constant -1 : i32
    %55 = vector.broadcast %c-1_i32 : i32 to vector<8x1x1xi32>
    %56 = arith.addi %50, %55 : vector<8x1x1xi32>
    %c0_i32_47 = arith.constant 0 : i32
    %57 = vector.broadcast %c0_i32_47 : i32 to vector<8x1x1xi32>
    %58 = arith.cmpi sge, %56, %57 : vector<8x1x1xi32>
    %c-1_i32_48 = arith.constant -1 : i32
    %59 = vector.broadcast %c-1_i32_48 : i32 to vector<8x1x1xi32>
    %60 = arith.addi %50, %59 : vector<8x1x1xi32>
    %c16_i32 = arith.constant 16 : i32
    %61 = vector.broadcast %c16_i32 : i32 to vector<8x1x1xi32>
    %62 = arith.cmpi slt, %60, %61 : vector<8x1x1xi32>
    %63 = arith.andi %58, %62 : vector<8x1x1xi1>
    %c-1_i32_49 = arith.constant -1 : i32
    %64 = vector.broadcast %c-1_i32_49 : i32 to vector<1x16x1xi32>
    %65 = arith.addi %51, %64 : vector<1x16x1xi32>
    %c0_i32_50 = arith.constant 0 : i32
    %66 = vector.broadcast %c0_i32_50 : i32 to vector<1x16x1xi32>
    %67 = arith.cmpi sge, %65, %66 : vector<1x16x1xi32>
    %68 = vector.broadcast %63 : vector<8x1x1xi1> to vector<8x16x1xi1>
    %69 = vector.broadcast %67 : vector<1x16x1xi1> to vector<8x16x1xi1>
    %70 = arith.andi %68, %69 : vector<8x16x1xi1>
    %c-1_i32_51 = arith.constant -1 : i32
    %71 = vector.broadcast %c-1_i32_51 : i32 to vector<1x16x1xi32>
    %72 = arith.addi %51, %71 : vector<1x16x1xi32>
    %c16_i32_52 = arith.constant 16 : i32
    %73 = vector.broadcast %c16_i32_52 : i32 to vector<1x16x1xi32>
    %74 = arith.cmpi slt, %72, %73 : vector<1x16x1xi32>
    %75 = vector.broadcast %74 : vector<1x16x1xi1> to vector<8x16x1xi1>
    %76 = arith.andi %70, %75 : vector<8x16x1xi1>
    %77 = vector.extract_strided_slice %52 {offsets = [0, 0, 0], sizes = [8, 16, 4], strides = [1, 1, 1]} : vector<10x16x4xf32> to vector<8x16x4xf32>
    %cst_53 = arith.constant 0.000000e+00 : f32
    %78 = vector.shape_cast %76 : vector<8x16x1xi1> to vector<8x16x1xi1>
    %79 = vector.broadcast %78 : vector<8x16x1xi1> to vector<8x16x4xi1>
    %80 = vector.broadcast %cst_53 : f32 to vector<8x16x4xf32>
    %81 = arith.select %79, %77, %80 : vector<8x16x4xi1>, vector<8x16x4xf32>
    %82 = vector.shape_cast %81 : vector<8x16x4xf32> to vector<128x4xf32>
    %83 = arith.truncf %82 : vector<128x4xf32> to vector<128x4xbf16>
    %c0_54 = arith.constant 0 : index
    %c0_55 = arith.constant 0 : index
    %c0_56 = arith.constant 0 : index
    %c0_57 = arith.constant 0 : index
    %84 = vector.load %arg6[%c0_54, %c0_55, %c0_56, %c0_57] : memref<3x3x4x4xbf16, #tpu.memory_space<vmem>>, vector<1x1x4x4xbf16>
    %85 = vector.shape_cast %84 : vector<1x1x4x4xbf16> to vector<4x4xbf16>
    %cst_58 = arith.constant dense<0.000000e+00> : vector<128x4xf32>
    %86 = tpu.matmul %83, %85, %cst_58 {dimension_numbers = #tpu.dot_dimension_numbers<[1], [0], [0], [1], [0, 0, 1, 1], [], []>} : vector<128x4xbf16>, vector<4x4xbf16>, vector<128x4xf32> -> vector<128x4xf32>
    %87 = arith.addf %54, %86 : vector<128x4xf32>
    %c0_i32_59 = arith.constant 0 : i32
    %88 = vector.broadcast %c0_i32_59 : i32 to vector<1x16x1xi32>
    %89 = arith.addi %51, %88 : vector<1x16x1xi32>
    %c0_i32_60 = arith.constant 0 : i32
    %90 = vector.broadcast %c0_i32_60 : i32 to vector<1x16x1xi32>
    %91 = arith.cmpi sge, %89, %90 : vector<1x16x1xi32>
    %92 = vector.broadcast %63 : vector<8x1x1xi1> to vector<8x16x1xi1>
    %93 = vector.broadcast %91 : vector<1x16x1xi1> to vector<8x16x1xi1>
    %94 = arith.andi %92, %93 : vector<8x16x1xi1>
    %c0_i32_61 = arith.constant 0 : i32
    %95 = vector.broadcast %c0_i32_61 : i32 to vector<1x16x1xi32>
    %96 = arith.addi %51, %95 : vector<1x16x1xi32>
    %c16_i32_62 = arith.constant 16 : i32
    %97 = vector.broadcast %c16_i32_62 : i32 to vector<1x16x1xi32>
    %98 = arith.cmpi slt, %96, %97 : vector<1x16x1xi32>
    %99 = vector.broadcast %98 : vector<1x16x1xi1> to vector<8x16x1xi1>
    %100 = arith.andi %94, %99 : vector<8x16x1xi1>
    %101 = vector.extract_strided_slice %47 {offsets = [0, 0, 0], sizes = [8, 16, 4], strides = [1, 1, 1]} : vector<10x16x4xf32> to vector<8x16x4xf32>
    %cst_63 = arith.constant 0.000000e+00 : f32
    %102 = vector.shape_cast %100 : vector<8x16x1xi1> to vector<8x16x1xi1>
    %103 = vector.broadcast %102 : vector<8x16x1xi1> to vector<8x16x4xi1>
    %104 = vector.broadcast %cst_63 : f32 to vector<8x16x4xf32>
    %105 = arith.select %103, %101, %104 : vector<8x16x4xi1>, vector<8x16x4xf32>
    %106 = vector.shape_cast %105 : vector<8x16x4xf32> to vector<128x4xf32>
    %107 = arith.truncf %106 : vector<128x4xf32> to vector<128x4xbf16>
    %c0_64 = arith.constant 0 : index
    %c1 = arith.constant 1 : index
    %c0_65 = arith.constant 0 : index
    %c0_66 = arith.constant 0 : index
    %108 = vector.load %arg6[%c0_64, %c1, %c0_65, %c0_66] : memref<3x3x4x4xbf16, #tpu.memory_space<vmem>>, vector<1x1x4x4xbf16>
    %109 = vector.shape_cast %108 : vector<1x1x4x4xbf16> to vector<4x4xbf16>
    %cst_67 = arith.constant dense<0.000000e+00> : vector<128x4xf32>
    %110 = tpu.matmul %107, %109, %cst_67 {dimension_numbers = #tpu.dot_dimension_numbers<[1], [0], [0], [1], [0, 0, 1, 1], [], []>} : vector<128x4xbf16>, vector<4x4xbf16>, vector<128x4xf32> -> vector<128x4xf32>
    %111 = arith.addf %87, %110 : vector<128x4xf32>
    %c1_i32_68 = arith.constant 1 : i32
    %112 = vector.broadcast %c1_i32_68 : i32 to vector<1x16x1xi32>
    %113 = arith.addi %51, %112 : vector<1x16x1xi32>
    %c0_i32_69 = arith.constant 0 : i32
    %114 = vector.broadcast %c0_i32_69 : i32 to vector<1x16x1xi32>
    %115 = arith.cmpi sge, %113, %114 : vector<1x16x1xi32>
    %116 = vector.broadcast %63 : vector<8x1x1xi1> to vector<8x16x1xi1>
    %117 = vector.broadcast %115 : vector<1x16x1xi1> to vector<8x16x1xi1>
    %118 = arith.andi %116, %117 : vector<8x16x1xi1>
    %c1_i32_70 = arith.constant 1 : i32
    %119 = vector.broadcast %c1_i32_70 : i32 to vector<1x16x1xi32>
    %120 = arith.addi %51, %119 : vector<1x16x1xi32>
    %c16_i32_71 = arith.constant 16 : i32
    %121 = vector.broadcast %c16_i32_71 : i32 to vector<1x16x1xi32>
    %122 = arith.cmpi slt, %120, %121 : vector<1x16x1xi32>
    %123 = vector.broadcast %122 : vector<1x16x1xi1> to vector<8x16x1xi1>
    %124 = arith.andi %118, %123 : vector<8x16x1xi1>
    %125 = vector.extract_strided_slice %53 {offsets = [0, 0, 0], sizes = [8, 16, 4], strides = [1, 1, 1]} : vector<10x16x4xf32> to vector<8x16x4xf32>
    %cst_72 = arith.constant 0.000000e+00 : f32
    %126 = vector.shape_cast %124 : vector<8x16x1xi1> to vector<8x16x1xi1>
    %127 = vector.broadcast %126 : vector<8x16x1xi1> to vector<8x16x4xi1>
    %128 = vector.broadcast %cst_72 : f32 to vector<8x16x4xf32>
    %129 = arith.select %127, %125, %128 : vector<8x16x4xi1>, vector<8x16x4xf32>
    %130 = vector.shape_cast %129 : vector<8x16x4xf32> to vector<128x4xf32>
    %131 = arith.truncf %130 : vector<128x4xf32> to vector<128x4xbf16>
    %c0_73 = arith.constant 0 : index
    %c2 = arith.constant 2 : index
    %c0_74 = arith.constant 0 : index
    %c0_75 = arith.constant 0 : index
    %132 = vector.load %arg6[%c0_73, %c2, %c0_74, %c0_75] : memref<3x3x4x4xbf16, #tpu.memory_space<vmem>>, vector<1x1x4x4xbf16>
    %133 = vector.shape_cast %132 : vector<1x1x4x4xbf16> to vector<4x4xbf16>
    %cst_76 = arith.constant dense<0.000000e+00> : vector<128x4xf32>
    %134 = tpu.matmul %131, %133, %cst_76 {dimension_numbers = #tpu.dot_dimension_numbers<[1], [0], [0], [1], [0, 0, 1, 1], [], []>} : vector<128x4xbf16>, vector<4x4xbf16>, vector<128x4xf32> -> vector<128x4xf32>
    %135 = arith.addf %111, %134 : vector<128x4xf32>
    %c0_i32_77 = arith.constant 0 : i32
    %136 = vector.broadcast %c0_i32_77 : i32 to vector<8x1x1xi32>
    %137 = arith.addi %50, %136 : vector<8x1x1xi32>
    %c0_i32_78 = arith.constant 0 : i32
    %138 = vector.broadcast %c0_i32_78 : i32 to vector<8x1x1xi32>
    %139 = arith.cmpi sge, %137, %138 : vector<8x1x1xi32>
    %c0_i32_79 = arith.constant 0 : i32
    %140 = vector.broadcast %c0_i32_79 : i32 to vector<8x1x1xi32>
    %141 = arith.addi %50, %140 : vector<8x1x1xi32>
    %c16_i32_80 = arith.constant 16 : i32
    %142 = vector.broadcast %c16_i32_80 : i32 to vector<8x1x1xi32>
    %143 = arith.cmpi slt, %141, %142 : vector<8x1x1xi32>
    %144 = arith.andi %139, %143 : vector<8x1x1xi1>
    %c-1_i32_81 = arith.constant -1 : i32
    %145 = vector.broadcast %c-1_i32_81 : i32 to vector<1x16x1xi32>
    %146 = arith.addi %51, %145 : vector<1x16x1xi32>
    %c0_i32_82 = arith.constant 0 : i32
    %147 = vector.broadcast %c0_i32_82 : i32 to vector<1x16x1xi32>
    %148 = arith.cmpi sge, %146, %147 : vector<1x16x1xi32>
    %149 = vector.broadcast %144 : vector<8x1x1xi1> to vector<8x16x1xi1>
    %150 = vector.broadcast %148 : vector<1x16x1xi1> to vector<8x16x1xi1>
    %151 = arith.andi %149, %150 : vector<8x16x1xi1>
    %c-1_i32_83 = arith.constant -1 : i32
    %152 = vector.broadcast %c-1_i32_83 : i32 to vector<1x16x1xi32>
    %153 = arith.addi %51, %152 : vector<1x16x1xi32>
    %c16_i32_84 = arith.constant 16 : i32
    %154 = vector.broadcast %c16_i32_84 : i32 to vector<1x16x1xi32>
    %155 = arith.cmpi slt, %153, %154 : vector<1x16x1xi32>
    %156 = vector.broadcast %155 : vector<1x16x1xi1> to vector<8x16x1xi1>
    %157 = arith.andi %151, %156 : vector<8x16x1xi1>
    %158 = vector.extract_strided_slice %52 {offsets = [1, 0, 0], sizes = [8, 16, 4], strides = [1, 1, 1]} : vector<10x16x4xf32> to vector<8x16x4xf32>
    %cst_85 = arith.constant 0.000000e+00 : f32
    %159 = vector.shape_cast %157 : vector<8x16x1xi1> to vector<8x16x1xi1>
    %160 = vector.broadcast %159 : vector<8x16x1xi1> to vector<8x16x4xi1>
    %161 = vector.broadcast %cst_85 : f32 to vector<8x16x4xf32>
    %162 = arith.select %160, %158, %161 : vector<8x16x4xi1>, vector<8x16x4xf32>
    %163 = vector.shape_cast %162 : vector<8x16x4xf32> to vector<128x4xf32>
    %164 = arith.truncf %163 : vector<128x4xf32> to vector<128x4xbf16>
    %c1_86 = arith.constant 1 : index
    %c0_87 = arith.constant 0 : index
    %c0_88 = arith.constant 0 : index
    %c0_89 = arith.constant 0 : index
    %165 = vector.load %arg6[%c1_86, %c0_87, %c0_88, %c0_89] : memref<3x3x4x4xbf16, #tpu.memory_space<vmem>>, vector<1x1x4x4xbf16>
    %166 = vector.shape_cast %165 : vector<1x1x4x4xbf16> to vector<4x4xbf16>
    %cst_90 = arith.constant dense<0.000000e+00> : vector<128x4xf32>
    %167 = tpu.matmul %164, %166, %cst_90 {dimension_numbers = #tpu.dot_dimension_numbers<[1], [0], [0], [1], [0, 0, 1, 1], [], []>} : vector<128x4xbf16>, vector<4x4xbf16>, vector<128x4xf32> -> vector<128x4xf32>
    %168 = arith.addf %135, %167 : vector<128x4xf32>
    %c0_i32_91 = arith.constant 0 : i32
    %169 = vector.broadcast %c0_i32_91 : i32 to vector<1x16x1xi32>
    %170 = arith.addi %51, %169 : vector<1x16x1xi32>
    %c0_i32_92 = arith.constant 0 : i32
    %171 = vector.broadcast %c0_i32_92 : i32 to vector<1x16x1xi32>
    %172 = arith.cmpi sge, %170, %171 : vector<1x16x1xi32>
    %173 = vector.broadcast %144 : vector<8x1x1xi1> to vector<8x16x1xi1>
    %174 = vector.broadcast %172 : vector<1x16x1xi1> to vector<8x16x1xi1>
    %175 = arith.andi %173, %174 : vector<8x16x1xi1>
    %c0_i32_93 = arith.constant 0 : i32
    %176 = vector.broadcast %c0_i32_93 : i32 to vector<1x16x1xi32>
    %177 = arith.addi %51, %176 : vector<1x16x1xi32>
    %c16_i32_94 = arith.constant 16 : i32
    %178 = vector.broadcast %c16_i32_94 : i32 to vector<1x16x1xi32>
    %179 = arith.cmpi slt, %177, %178 : vector<1x16x1xi32>
    %180 = vector.broadcast %179 : vector<1x16x1xi1> to vector<8x16x1xi1>
    %181 = arith.andi %175, %180 : vector<8x16x1xi1>
    %182 = vector.extract_strided_slice %47 {offsets = [1, 0, 0], sizes = [8, 16, 4], strides = [1, 1, 1]} : vector<10x16x4xf32> to vector<8x16x4xf32>
    %cst_95 = arith.constant 0.000000e+00 : f32
    %183 = vector.shape_cast %181 : vector<8x16x1xi1> to vector<8x16x1xi1>
    %184 = vector.broadcast %183 : vector<8x16x1xi1> to vector<8x16x4xi1>
    %185 = vector.broadcast %cst_95 : f32 to vector<8x16x4xf32>
    %186 = arith.select %184, %182, %185 : vector<8x16x4xi1>, vector<8x16x4xf32>
    %187 = vector.shape_cast %186 : vector<8x16x4xf32> to vector<128x4xf32>
    %188 = arith.truncf %187 : vector<128x4xf32> to vector<128x4xbf16>
    %c1_96 = arith.constant 1 : index
    %c1_97 = arith.constant 1 : index
    %c0_98 = arith.constant 0 : index
    %c0_99 = arith.constant 0 : index
    %189 = vector.load %arg6[%c1_96, %c1_97, %c0_98, %c0_99] : memref<3x3x4x4xbf16, #tpu.memory_space<vmem>>, vector<1x1x4x4xbf16>
    %190 = vector.shape_cast %189 : vector<1x1x4x4xbf16> to vector<4x4xbf16>
    %cst_100 = arith.constant dense<0.000000e+00> : vector<128x4xf32>
    %191 = tpu.matmul %188, %190, %cst_100 {dimension_numbers = #tpu.dot_dimension_numbers<[1], [0], [0], [1], [0, 0, 1, 1], [], []>} : vector<128x4xbf16>, vector<4x4xbf16>, vector<128x4xf32> -> vector<128x4xf32>
    %192 = arith.addf %168, %191 : vector<128x4xf32>
    %c1_i32_101 = arith.constant 1 : i32
    %193 = vector.broadcast %c1_i32_101 : i32 to vector<1x16x1xi32>
    %194 = arith.addi %51, %193 : vector<1x16x1xi32>
    %c0_i32_102 = arith.constant 0 : i32
    %195 = vector.broadcast %c0_i32_102 : i32 to vector<1x16x1xi32>
    %196 = arith.cmpi sge, %194, %195 : vector<1x16x1xi32>
    %197 = vector.broadcast %144 : vector<8x1x1xi1> to vector<8x16x1xi1>
    %198 = vector.broadcast %196 : vector<1x16x1xi1> to vector<8x16x1xi1>
    %199 = arith.andi %197, %198 : vector<8x16x1xi1>
    %c1_i32_103 = arith.constant 1 : i32
    %200 = vector.broadcast %c1_i32_103 : i32 to vector<1x16x1xi32>
    %201 = arith.addi %51, %200 : vector<1x16x1xi32>
    %c16_i32_104 = arith.constant 16 : i32
    %202 = vector.broadcast %c16_i32_104 : i32 to vector<1x16x1xi32>
    %203 = arith.cmpi slt, %201, %202 : vector<1x16x1xi32>
    %204 = vector.broadcast %203 : vector<1x16x1xi1> to vector<8x16x1xi1>
    %205 = arith.andi %199, %204 : vector<8x16x1xi1>
    %206 = vector.extract_strided_slice %53 {offsets = [1, 0, 0], sizes = [8, 16, 4], strides = [1, 1, 1]} : vector<10x16x4xf32> to vector<8x16x4xf32>
    %cst_105 = arith.constant 0.000000e+00 : f32
    %207 = vector.shape_cast %205 : vector<8x16x1xi1> to vector<8x16x1xi1>
    %208 = vector.broadcast %207 : vector<8x16x1xi1> to vector<8x16x4xi1>
    %209 = vector.broadcast %cst_105 : f32 to vector<8x16x4xf32>
    %210 = arith.select %208, %206, %209 : vector<8x16x4xi1>, vector<8x16x4xf32>
    %211 = vector.shape_cast %210 : vector<8x16x4xf32> to vector<128x4xf32>
    %212 = arith.truncf %211 : vector<128x4xf32> to vector<128x4xbf16>
    %c1_106 = arith.constant 1 : index
    %c2_107 = arith.constant 2 : index
    %c0_108 = arith.constant 0 : index
    %c0_109 = arith.constant 0 : index
    %213 = vector.load %arg6[%c1_106, %c2_107, %c0_108, %c0_109] : memref<3x3x4x4xbf16, #tpu.memory_space<vmem>>, vector<1x1x4x4xbf16>
    %214 = vector.shape_cast %213 : vector<1x1x4x4xbf16> to vector<4x4xbf16>
    %cst_110 = arith.constant dense<0.000000e+00> : vector<128x4xf32>
    %215 = tpu.matmul %212, %214, %cst_110 {dimension_numbers = #tpu.dot_dimension_numbers<[1], [0], [0], [1], [0, 0, 1, 1], [], []>} : vector<128x4xbf16>, vector<4x4xbf16>, vector<128x4xf32> -> vector<128x4xf32>
    %216 = arith.addf %192, %215 : vector<128x4xf32>
    %c1_i32_111 = arith.constant 1 : i32
    %217 = vector.broadcast %c1_i32_111 : i32 to vector<8x1x1xi32>
    %218 = arith.addi %50, %217 : vector<8x1x1xi32>
    %c0_i32_112 = arith.constant 0 : i32
    %219 = vector.broadcast %c0_i32_112 : i32 to vector<8x1x1xi32>
    %220 = arith.cmpi sge, %218, %219 : vector<8x1x1xi32>
    %c1_i32_113 = arith.constant 1 : i32
    %221 = vector.broadcast %c1_i32_113 : i32 to vector<8x1x1xi32>
    %222 = arith.addi %50, %221 : vector<8x1x1xi32>
    %c16_i32_114 = arith.constant 16 : i32
    %223 = vector.broadcast %c16_i32_114 : i32 to vector<8x1x1xi32>
    %224 = arith.cmpi slt, %222, %223 : vector<8x1x1xi32>
    %225 = arith.andi %220, %224 : vector<8x1x1xi1>
    %c-1_i32_115 = arith.constant -1 : i32
    %226 = vector.broadcast %c-1_i32_115 : i32 to vector<1x16x1xi32>
    %227 = arith.addi %51, %226 : vector<1x16x1xi32>
    %c0_i32_116 = arith.constant 0 : i32
    %228 = vector.broadcast %c0_i32_116 : i32 to vector<1x16x1xi32>
    %229 = arith.cmpi sge, %227, %228 : vector<1x16x1xi32>
    %230 = vector.broadcast %225 : vector<8x1x1xi1> to vector<8x16x1xi1>
    %231 = vector.broadcast %229 : vector<1x16x1xi1> to vector<8x16x1xi1>
    %232 = arith.andi %230, %231 : vector<8x16x1xi1>
    %c-1_i32_117 = arith.constant -1 : i32
    %233 = vector.broadcast %c-1_i32_117 : i32 to vector<1x16x1xi32>
    %234 = arith.addi %51, %233 : vector<1x16x1xi32>
    %c16_i32_118 = arith.constant 16 : i32
    %235 = vector.broadcast %c16_i32_118 : i32 to vector<1x16x1xi32>
    %236 = arith.cmpi slt, %234, %235 : vector<1x16x1xi32>
    %237 = vector.broadcast %236 : vector<1x16x1xi1> to vector<8x16x1xi1>
    %238 = arith.andi %232, %237 : vector<8x16x1xi1>
    %239 = vector.extract_strided_slice %52 {offsets = [2, 0, 0], sizes = [8, 16, 4], strides = [1, 1, 1]} : vector<10x16x4xf32> to vector<8x16x4xf32>
    %cst_119 = arith.constant 0.000000e+00 : f32
    %240 = vector.shape_cast %238 : vector<8x16x1xi1> to vector<8x16x1xi1>
    %241 = vector.broadcast %240 : vector<8x16x1xi1> to vector<8x16x4xi1>
    %242 = vector.broadcast %cst_119 : f32 to vector<8x16x4xf32>
    %243 = arith.select %241, %239, %242 : vector<8x16x4xi1>, vector<8x16x4xf32>
    %244 = vector.shape_cast %243 : vector<8x16x4xf32> to vector<128x4xf32>
    %245 = arith.truncf %244 : vector<128x4xf32> to vector<128x4xbf16>
    %c2_120 = arith.constant 2 : index
    %c0_121 = arith.constant 0 : index
    %c0_122 = arith.constant 0 : index
    %c0_123 = arith.constant 0 : index
    %246 = vector.load %arg6[%c2_120, %c0_121, %c0_122, %c0_123] : memref<3x3x4x4xbf16, #tpu.memory_space<vmem>>, vector<1x1x4x4xbf16>
    %247 = vector.shape_cast %246 : vector<1x1x4x4xbf16> to vector<4x4xbf16>
    %cst_124 = arith.constant dense<0.000000e+00> : vector<128x4xf32>
    %248 = tpu.matmul %245, %247, %cst_124 {dimension_numbers = #tpu.dot_dimension_numbers<[1], [0], [0], [1], [0, 0, 1, 1], [], []>} : vector<128x4xbf16>, vector<4x4xbf16>, vector<128x4xf32> -> vector<128x4xf32>
    %249 = arith.addf %216, %248 : vector<128x4xf32>
    %c0_i32_125 = arith.constant 0 : i32
    %250 = vector.broadcast %c0_i32_125 : i32 to vector<1x16x1xi32>
    %251 = arith.addi %51, %250 : vector<1x16x1xi32>
    %c0_i32_126 = arith.constant 0 : i32
    %252 = vector.broadcast %c0_i32_126 : i32 to vector<1x16x1xi32>
    %253 = arith.cmpi sge, %251, %252 : vector<1x16x1xi32>
    %254 = vector.broadcast %225 : vector<8x1x1xi1> to vector<8x16x1xi1>
    %255 = vector.broadcast %253 : vector<1x16x1xi1> to vector<8x16x1xi1>
    %256 = arith.andi %254, %255 : vector<8x16x1xi1>
    %c0_i32_127 = arith.constant 0 : i32
    %257 = vector.broadcast %c0_i32_127 : i32 to vector<1x16x1xi32>
    %258 = arith.addi %51, %257 : vector<1x16x1xi32>
    %c16_i32_128 = arith.constant 16 : i32
    %259 = vector.broadcast %c16_i32_128 : i32 to vector<1x16x1xi32>
    %260 = arith.cmpi slt, %258, %259 : vector<1x16x1xi32>
    %261 = vector.broadcast %260 : vector<1x16x1xi1> to vector<8x16x1xi1>
    %262 = arith.andi %256, %261 : vector<8x16x1xi1>
    %263 = vector.extract_strided_slice %47 {offsets = [2, 0, 0], sizes = [8, 16, 4], strides = [1, 1, 1]} : vector<10x16x4xf32> to vector<8x16x4xf32>
    %cst_129 = arith.constant 0.000000e+00 : f32
    %264 = vector.shape_cast %262 : vector<8x16x1xi1> to vector<8x16x1xi1>
    %265 = vector.broadcast %264 : vector<8x16x1xi1> to vector<8x16x4xi1>
    %266 = vector.broadcast %cst_129 : f32 to vector<8x16x4xf32>
    %267 = arith.select %265, %263, %266 : vector<8x16x4xi1>, vector<8x16x4xf32>
    %268 = vector.shape_cast %267 : vector<8x16x4xf32> to vector<128x4xf32>
    %269 = arith.truncf %268 : vector<128x4xf32> to vector<128x4xbf16>
    %c2_130 = arith.constant 2 : index
    %c1_131 = arith.constant 1 : index
    %c0_132 = arith.constant 0 : index
    %c0_133 = arith.constant 0 : index
    %270 = vector.load %arg6[%c2_130, %c1_131, %c0_132, %c0_133] : memref<3x3x4x4xbf16, #tpu.memory_space<vmem>>, vector<1x1x4x4xbf16>
    %271 = vector.shape_cast %270 : vector<1x1x4x4xbf16> to vector<4x4xbf16>
    %cst_134 = arith.constant dense<0.000000e+00> : vector<128x4xf32>
    %272 = tpu.matmul %269, %271, %cst_134 {dimension_numbers = #tpu.dot_dimension_numbers<[1], [0], [0], [1], [0, 0, 1, 1], [], []>} : vector<128x4xbf16>, vector<4x4xbf16>, vector<128x4xf32> -> vector<128x4xf32>
    %273 = arith.addf %249, %272 : vector<128x4xf32>
    %c1_i32_135 = arith.constant 1 : i32
    %274 = vector.broadcast %c1_i32_135 : i32 to vector<1x16x1xi32>
    %275 = arith.addi %51, %274 : vector<1x16x1xi32>
    %c0_i32_136 = arith.constant 0 : i32
    %276 = vector.broadcast %c0_i32_136 : i32 to vector<1x16x1xi32>
    %277 = arith.cmpi sge, %275, %276 : vector<1x16x1xi32>
    %278 = vector.broadcast %225 : vector<8x1x1xi1> to vector<8x16x1xi1>
    %279 = vector.broadcast %277 : vector<1x16x1xi1> to vector<8x16x1xi1>
    %280 = arith.andi %278, %279 : vector<8x16x1xi1>
    %c1_i32_137 = arith.constant 1 : i32
    %281 = vector.broadcast %c1_i32_137 : i32 to vector<1x16x1xi32>
    %282 = arith.addi %51, %281 : vector<1x16x1xi32>
    %c16_i32_138 = arith.constant 16 : i32
    %283 = vector.broadcast %c16_i32_138 : i32 to vector<1x16x1xi32>
    %284 = arith.cmpi slt, %282, %283 : vector<1x16x1xi32>
    %285 = vector.broadcast %284 : vector<1x16x1xi1> to vector<8x16x1xi1>
    %286 = arith.andi %280, %285 : vector<8x16x1xi1>
    %287 = vector.extract_strided_slice %53 {offsets = [2, 0, 0], sizes = [8, 16, 4], strides = [1, 1, 1]} : vector<10x16x4xf32> to vector<8x16x4xf32>
    %cst_139 = arith.constant 0.000000e+00 : f32
    %288 = vector.shape_cast %286 : vector<8x16x1xi1> to vector<8x16x1xi1>
    %289 = vector.broadcast %288 : vector<8x16x1xi1> to vector<8x16x4xi1>
    %290 = vector.broadcast %cst_139 : f32 to vector<8x16x4xf32>
    %291 = arith.select %289, %287, %290 : vector<8x16x4xi1>, vector<8x16x4xf32>
    %292 = vector.shape_cast %291 : vector<8x16x4xf32> to vector<128x4xf32>
    %293 = arith.truncf %292 : vector<128x4xf32> to vector<128x4xbf16>
    %c2_140 = arith.constant 2 : index
    %c2_141 = arith.constant 2 : index
    %c0_142 = arith.constant 0 : index
    %c0_143 = arith.constant 0 : index
    %294 = vector.load %arg6[%c2_140, %c2_141, %c0_142, %c0_143] : memref<3x3x4x4xbf16, #tpu.memory_space<vmem>>, vector<1x1x4x4xbf16>
    %295 = vector.shape_cast %294 : vector<1x1x4x4xbf16> to vector<4x4xbf16>
    %cst_144 = arith.constant dense<0.000000e+00> : vector<128x4xf32>
    %296 = tpu.matmul %293, %295, %cst_144 {dimension_numbers = #tpu.dot_dimension_numbers<[1], [0], [0], [1], [0, 0, 1, 1], [], []>} : vector<128x4xbf16>, vector<4x4xbf16>, vector<128x4xf32> -> vector<128x4xf32>
    %297 = arith.addf %273, %296 : vector<128x4xf32>
    %c0_145 = arith.constant 0 : index
    %c0_146 = arith.constant 0 : index
    %298 = vector.load %arg7[%c0_145, %c0_146] : memref<1x4xf32, #tpu.memory_space<vmem>>, vector<1x4xf32>
    %299 = vector.broadcast %298 : vector<1x4xf32> to vector<128x4xf32>
    %300 = arith.mulf %297, %299 : vector<128x4xf32>
    %c0_147 = arith.constant 0 : index
    %c0_148 = arith.constant 0 : index
    %301 = vector.load %arg8[%c0_147, %c0_148] : memref<1x4xf32, #tpu.memory_space<vmem>>, vector<1x4xf32>
    %302 = vector.broadcast %301 : vector<1x4xf32> to vector<128x4xf32>
    %303 = arith.addf %300, %302 : vector<128x4xf32>
    %cst_149 = arith.constant 0.000000e+00 : f32
    %304 = vector.broadcast %cst_149 : f32 to vector<128x4xf32>
    %305 = arith.maximumf %303, %304 : vector<128x4xf32>
    %306 = arith.truncf %305 : vector<128x4xf32> to vector<128x4xbf16>
    %c1_150 = arith.constant 1 : index
    %c0_151 = arith.constant 0 : index
    %c0_152 = arith.constant 0 : index
    %307 = vector.load %arg13[%c1_150, %c0_151, %c0_152] : memref<10x16x16xbf16, #tpu.memory_space<vmem>>, vector<8x16x16xbf16>
    %308 = arith.extf %307 : vector<8x16x16xbf16> to vector<8x16x16xf32>
    %309 = vector.shape_cast %308 : vector<8x16x16xf32> to vector<128x16xf32>
    %c0_153 = arith.constant 0 : index
    %c0_154 = arith.constant 0 : index
    %310 = vector.load %arg9[%c0_153, %c0_154] : memref<4x16xbf16, #tpu.memory_space<vmem>>, vector<4x16xbf16>
    %cst_155 = arith.constant dense<0.000000e+00> : vector<128x16xf32>
    %311 = tpu.matmul %306, %310, %cst_155 {dimension_numbers = #tpu.dot_dimension_numbers<[1], [0], [0], [1], [0, 0, 1, 1], [], []>} : vector<128x4xbf16>, vector<4x16xbf16>, vector<128x16xf32> -> vector<128x16xf32>
    %c0_156 = arith.constant 0 : index
    %c0_157 = arith.constant 0 : index
    %312 = vector.load %arg10[%c0_156, %c0_157] : memref<1x16xf32, #tpu.memory_space<vmem>>, vector<1x16xf32>
    %313 = vector.broadcast %312 : vector<1x16xf32> to vector<128x16xf32>
    %314 = arith.mulf %311, %313 : vector<128x16xf32>
    %c0_158 = arith.constant 0 : index
    %c0_159 = arith.constant 0 : index
    %315 = vector.load %arg11[%c0_158, %c0_159] : memref<1x16xf32, #tpu.memory_space<vmem>>, vector<1x16xf32>
    %316 = vector.broadcast %315 : vector<1x16xf32> to vector<128x16xf32>
    %317 = arith.addf %314, %316 : vector<128x16xf32>
    %318 = arith.addf %317, %309 : vector<128x16xf32>
    %cst_160 = arith.constant 0.000000e+00 : f32
    %319 = vector.broadcast %cst_160 : f32 to vector<128x16xf32>
    %320 = arith.maximumf %318, %319 : vector<128x16xf32>
    %321 = vector.shape_cast %320 : vector<128x16xf32> to vector<1x8x16x16xf32>
    %c0_161 = arith.constant 0 : index
    %c0_162 = arith.constant 0 : index
    %c0_163 = arith.constant 0 : index
    %c0_164 = arith.constant 0 : index
    %322 = vector.load %arg12[%c0_161, %c0_162, %c0_163, %c0_164] : memref<1x8x16x16xf32, #tpu.memory_space<vmem>>, vector<1x8x16x16xf32>
    tpu.vector_store %arg12[%c0_161, %c0_162, %c0_163, %c0_164], %321 {strides = array<i32>} : memref<1x8x16x16xf32, #tpu.memory_space<vmem>>, vector<1x8x16x16xf32>,
    return
  }
  func.func @transform_1(%arg0: i32, %arg1: i32) -> (i32, i32) {
    %c0_i32 = arith.constant 0 : i32
    %c0_i32_0 = arith.constant 0 : i32
    %c0_i32_1 = arith.constant 0 : i32
    return %c0_i32, %c0_i32_0 : i32, i32
  }
  func.func @transform_2(%arg0: i32, %arg1: i32) -> (i32, i32) {
    %c0_i32 = arith.constant 0 : i32
    %c0_i32_0 = arith.constant 0 : i32
    %c0_i32_1 = arith.constant 0 : i32
    return %c0_i32, %c0_i32_0 : i32, i32
  }
  func.func @transform_3(%arg0: i32, %arg1: i32) -> (i32, i32) {
    %c0_i32 = arith.constant 0 : i32
    %c0_i32_0 = arith.constant 0 : i32
    %c0_i32_1 = arith.constant 0 : i32
    return %c0_i32, %c0_i32_0 : i32, i32
  }
  func.func @transform_4(%arg0: i32, %arg1: i32) -> (i32, i32, i32, i32) {
    %c0_i32 = arith.constant 0 : i32
    %c0_i32_0 = arith.constant 0 : i32
    %c0_i32_1 = arith.constant 0 : i32
    %c0_i32_2 = arith.constant 0 : i32
    %c0_i32_3 = arith.constant 0 : i32
    return %c0_i32, %c0_i32_0, %c0_i32_1, %c0_i32_2 : i32, i32, i32, i32
  }
  func.func @transform_5(%arg0: i32, %arg1: i32) -> (i32, i32) {
    %c0_i32 = arith.constant 0 : i32
    %c0_i32_0 = arith.constant 0 : i32
    %c0_i32_1 = arith.constant 0 : i32
    return %c0_i32, %c0_i32_0 : i32, i32
  }
  func.func @transform_6(%arg0: i32, %arg1: i32) -> (i32, i32) {
    %c0_i32 = arith.constant 0 : i32
    %c0_i32_0 = arith.constant 0 : i32
    %c0_i32_1 = arith.constant 0 : i32
    return %c0_i32, %c0_i32_0 : i32, i32
  }
  func.func @transform_7(%arg0: i32, %arg1: i32) -> (i32, i32) {
    %c0_i32 = arith.constant 0 : i32
    %c0_i32_0 = arith.constant 0 : i32
    %c0_i32_1 = arith.constant 0 : i32
    return %c0_i32, %c0_i32_0 : i32, i32
  }
  func.func @transform_8(%arg0: i32, %arg1: i32) -> (i32, i32) {
    %c0_i32 = arith.constant 0 : i32
    %c0_i32_0 = arith.constant 0 : i32
    %c0_i32_1 = arith.constant 0 : i32
    return %c0_i32, %c0_i32_0 : i32, i32
  }
  func.func @transform_9(%arg0: i32, %arg1: i32) -> (i32, i32) {
    %c0_i32 = arith.constant 0 : i32
    %c0_i32_0 = arith.constant 0 : i32
    %c0_i32_1 = arith.constant 0 : i32
    return %c0_i32, %c0_i32_0 : i32, i32
  }
  func.func @transform_10(%arg0: i32, %arg1: i32) -> (i32, i32, i32, i32) {
    %c0_i32 = arith.constant 0 : i32
    %c0_i32_0 = arith.constant 0 : i32
    %c0_i32_1 = arith.constant 0 : i32
    return %arg0, %arg1, %c0_i32, %c0_i32_0 : i32, i32, i32, i32
  }
}

</mosaic_0001>

<bundles_post_ra>
// kernel: bottleneck_forward.1
= control target key start
LH: loop header
LB: loop body
LE: loop exit
PB: predicated region body
PF: predicated region fallthrough
CT: control target
= control target key end

     0   :  { %s3293_s13 = smov 0   ;;  %s3295_s14 = smov 0   ;;  %s4837_s0 = inlined_call_operand.vmem [shape: bf16[2,16,16,16], index: 0, kind: input, shape index: {}]   ;;  %s4838_s1 = inlined_call_operand.vmem [shape: bf16[16,4], index: 1, kind: input, shape index: {}]   ;;  %s4839_s2 = inlined_call_operand.vmem [shape: f32[1,4], index: 2, kind: input, shape index: {}]   ;;  %s4840_s3 = inlined_call_operand.vmem [shape: f32[1,4], index: 3, kind: input, shape index: {}]   ;;  %s4841_s4 = inlined_call_operand.vmem [shape: bf16[3,3,4,4], index: 4, kind: input, shape index: {}]   ;;  %s4842_s5 = inlined_call_operand.vmem [shape: f32[1,4], index: 5, kind: input, shape index: {}]   ;;  %s4843_s6 = inlined_call_operand.vmem [shape: f32[1,4], index: 6, kind: input, shape index: {}]   ;;  %s4844_s7 = inlined_call_operand.vmem [shape: bf16[4,16], index: 7, kind: input, shape index: {}]   ;;  %s4845_s8 = inlined_call_operand.vmem [shape: f32[1,16], index: 8, kind: input, shape index: {}]   ;;  %s4846_s9 = inlined_call_operand.vmem [shape: f32[1,16], index: 9, kind: input, shape index: {}]   ;;  %s4847_s10 = inlined_call_operand.vmem [shape: f32[2,16,16,16], index: 10, kind: output, shape index: {}]  }
   0x1   :  { %s3297_s15 = smov 0   ;;  %s3299_s16 = smov 0  }
   0x2   :  { %s3301_s17 = smov 0  }
   0x3 LB: > { %4852 = sst [smem:[#allocation10_spill]] %s3232_s16  ;;  %s29_s18 = sadd.s32 1, %s3228_s15  ;;  %s3236_s17 = sphi %s3301_s17, %s20_s17   ;;  %s3232_s16 = sphi %s3299_s16, %s5000_s16   ;;  %s3228_s15 = sphi %s3297_s15, %s4999_s15   ;;  %s3224_s14 = sphi %s3295_s14, %s4995_s14   ;;  %s3220_s13 = sphi %s3293_s13, %s4998_s13  }
   0x4   : > { %s32_s19 = sadd.s32 1, %s3232_s16  ;;  %p30_p0 = scmp.ge.s32.totalorder %s29_s18, 2 }
   0x5   : > { %p2929_p1 = scmp.ge.s32.totalorder %s3236_s17, 1  ;;  %p292_p2 = scmp.lt.s32.totalorder %s3236_s17, 5 }
   0x6   : > { %s5002_s18 = smov (%p30_p0, %s29_s18), 0  ;;  %s5004_s19 = smov (!%p30_p0, %s32_s19), %s3232_s16 }
   0x7   : > { %4853 = sst [smem:[#allocation11_spill]] %s5002_s18  ;;  %p293_p3 = pnand %p2929_p1, %p292_p2 }
   0x8   : > { %p34_p4 = scmp.ge.s32.totalorder %s5004_s19, 2  ;;  %s3328_s20 = sshll.u32 (!%p293_p3), %s3220_s13, 3 }
   0x9   : > { %296 = sbr.rel (%p293_p3) target bundleno = 866 (0x362), region = 56  ;;  %p329_p5 = scmp.lt.s32.totalorder (!%p293_p3), %s3224_s14, 1 }
   0xa   : > { %s5006_s19 = smov (%p34_p4, %s5004_s19), 0  ;;  %p331_p6 = scmp.lt.s32.totalorder (!%p293_p3), %s3328_s20, 15 }
   0xb   : > { %4854 = sst [smem:[#allocation12_spill]] %s5006_s19  ;;  %s2935_s21 = sadd.s32 (!%p293_p3), 4294967295, %s3328_s20 }
   0xc   : > { %p342_p7 = scmp.gt.s32.totalorder (!%p293_p3), %s2935_s21, 0  ;;  %s344_s26 = sadd.s32 (!%p293_p3), 8, %s3328_s20 }
   0xd   : > { %p345_p8 = scmp.lt.s32.totalorder (!%p293_p3), %s344_s26, 15  ;;  %s3090_s29 = sshll.u32 (!%p293_p3), %s3220_s13, 4 }
   0xe   : > { %s330_s22 = scalar_select %p329_p5, %s3224_s14, 1 }
   0xf   : > { %s332_s23 = scalar_select %p331_p6, %s3328_s20, 15 }
  0x10   : > { %s2932_s24 = sshll.u32 %s330_s22, 5  ;;  %s3343_s19 = sshll.u32 %s3224_s14, 5 }
  0x11   : > { %s2931_s25 = sshll.u32 %s332_s23, 1  ;;  %s5008_s21 = smov (!%p342_p7, %s2935_s21), 0 }
  0x12   : > { %s335_s27 = sadd.s32 %s2932_s24, %s2931_s25  ;;  %s5010_s26 = smov (!%p345_p8, %s344_s26), 15 }
  0x13   : > { %s2933_s28 = sshll.u32 %s335_s27, 3  ;;  %s349_s18 = sadd.s32 %s3090_s29, %s3343_s19 }
  0x14   : > { %s3340_s12 = scalar_lea.vmem %s4847_s10, %s2933_s28  ;;  %s2938_s22 = sshll.u32 %s349_s18, 2 }
  0x15   : > { %s351_s24 = scalar_lea.vmem %s4837_s0, %s2938_s22 }
  0x16   : > { %v363_v0 = vld [vmem:[%s351_s24] sm:$0xff]  ;;  %v365_v1 = vld [vmem:[%s351_s24 + $0x8] sm:$0xff]  ;;  %v367_v2 = vld [vmem:[%s351_s24 + $0x10] sm:$0xff] }
  0x17   : > { %364 = vst [vmem:[#allocation2 + $0x38] sm:$0xff] %v363_v0  ;;  %v369_v3 = vld [vmem:[%s351_s24 + $0x18] sm:$0xff]  ;;  %v371_v4 = vld [vmem:[%s351_s24 + $0x20] sm:$0xff]  ;;  %v373_v5 = vld [vmem:[%s351_s24 + $0x28] sm:$0xff] }
  0x18   : > { %366 = vst [vmem:[#allocation2 + $0x8] sm:$0xff] %v365_v1  ;;  %v375_v6 = vld [vmem:[%s351_s24 + $0x30] sm:$0xff]  ;;  %v377_v7 = vld [vmem:[%s351_s24 + $0x38] sm:$0xff] }
  0x19   : > { %368 = vst [vmem:[#allocation2 + $0x20] sm:$0xff] %v367_v2 }
  0x1a   : > { %370 = vst [vmem:[#allocation2 + $0x18] sm:$0xff] %v369_v3 }
  0x1b   : > { %372 = vst [vmem:[#allocation2 + $0x48] sm:$0xff] %v371_v4 }
  0x1c   : > { %374 = vst [vmem:[#allocation2 + $0x30] sm:$0xff] %v373_v5 }
  0x1d   : > { %376 = vst [vmem:[#allocation2 + $0x10] sm:$0xff] %v375_v6 }
  0x1e   : > { %378 = vst [vmem:[#allocation2 + $0x28] sm:$0xff] %v377_v7 }
  0x1f   : > { %384 = vsyncadd [#allocation3], 1024  ;;  %s2939_s13 = sshll.u32 %s5008_s21, 1 }
  0x20   : > { %s386_s14 = sadd.s32 %s2939_s13, %s3343_s19 }
  0x21   : > { %s2940_s16 = sshll.u32 %s386_s14, 2 }
  0x22   : > { %s388_s27 = scalar_lea.vmem %s4837_s0, %s2940_s16 }
  0x23   : > { %v416_v8 = vld [vmem:[%s388_s27] sm:$0xff] }
  0x24   : > { %417 = vst [vmem:[#allocation2] sm:$0xff] %v416_v8 }
  0x25   : > { %423 = vsyncadd [#allocation3 + $0x1], 128  ;;  %s2941_s28 = sshll.u32 %s5010_s26, 1 }
  0x26   : > { %s425_s29 = sadd.s32 %s2941_s28, %s3343_s19 }
  0x27   : > { %s2942_s30 = sshll.u32 %s425_s29, 2 }
  0x28   : > { %s427_s23 = scalar_lea.vmem %s4837_s0, %s2942_s30 }
  0x29   : > { %v456_v9 = vld [vmem:[%s427_s23] sm:$0xff] }
  0x2a   : > { %457 = vst [vmem:[#allocation2 + $0x40] sm:$0xff] %v456_v9 }
  0x2b   : > { %463 = vsyncadd [#allocation3 + $0x2], 128 }
  0x2c   : > { %3212 = dma.done.wait [#allocation3], 1024 }
  0x2d   : > { %3213 = vsyncadd [#allocation3], 4294966272 }
  0x2e   : > { %3214 = dma.done.wait [#allocation3 + $0x1], 128 }
  0x2f   : > { %3215 = vsyncadd [#allocation3 + $0x1], 4294967168 }
  0x30   : > { %3216 = dma.done.wait [#allocation3 + $0x2], 128 }
  0x31   : > { %3217 = vsyncadd [#allocation3 + $0x2], 4294967168  ;;  %v3101_v10 = vld [vmem:[%s4838_s1] sm:$0xff]  ;;  %vm4849_vm0 = vcmask 130048   ;;  %v3092_v12 = vld [vmem:[#allocation2 + $0x38] sm:$0xff]  ;;  %vm4850_vm1 = vcmask 1041408   ;;  %v720_v30 = vlaneseq  ;;  %v3400_v33 = vstv %s3328_s20 }
  0x32   : > { %v3091_v11 = vld [vmem:[#allocation2] sm:$0xff]  ;;  %592 = vmatpush.bf16.msra.mxu0 %v3101_v10  ;;  %v3093_v13 = vld [vmem:[#allocation2 + $0x8] sm:$0xff]  ;;  %v3095_v15 = vld [vmem:[#allocation2 + $0x18] sm:$0xff]  ;;  %v3404_v36 = vadd.s32 1, %v3400_v33  ;;  %v805_v42 = vadd.s32 4294967295, %v3400_v33  ;;  %vm1408_vm6 = vcmp.ge.s32.totalorder %v3400_v33, 0 }
  0x33   : > { %v3094_v14 = vld [vmem:[#allocation2 + $0x20] sm:$0xff]  ;;  %v3096_v16 = vld [vmem:[#allocation2 + $0x48] sm:$0xff]  ;;  %v3097_v17 = vld [vmem:[#allocation2 + $0x30] sm:$0xff]  ;;  %v3406_v37 = vshrl.u32 %v720_v30, 7  ;;  %vm1416_vm7 = vcmp.lt.s32.totalorder %v3400_v33, 16  ;;  %vm1058_vm15 = vcmask 31744  }
  0x34   : > { %v3098_v18 = vld [vmem:[#allocation2 + $0x10] sm:$0xff]  ;;  %v2997_v19 = vld [vmem:[%s4841_s4 + $0x2] sm:$0x3]  ;;  %v3099_v21 = vld [vmem:[#allocation2 + $0x28] sm:$0xff]  ;;  %v806_v44 = vadd.s32 4294967295, %v3404_v36  ;;  %vm813_vm2 = vcmp.ge.s32.totalorder %v805_v42, 0 }
  0x35   : > { %2987 = vmatmul.msk.bf16.vlgmr.msra.gmra.mxu0 %vm4849_vm0, %v3091_v11  ;;  %v1085_v20 = vsel %vm4850_vm1, %v2997_v19, 0  ;;  %v955_v23 = vld [vmem:[%s4841_s4] sm:$0x3]  ;;  %v3014_v24 = vld [vmem:[%s4841_s4 + $0x4] sm:$0x3]  ;;  %v722_v45 = vadd.s32 8, %v3406_v37  ;;  %vm3446_vm12 = vmand %vm1408_vm6, %vm1416_vm7 }
  0x36   : > { %3141 = vmatpush.bf16.msra.mxu1 %v1085_v20  ;;  %1094 = vmatpush.bf16.msrb.mxu0 %v1085_v20  ;;  %v1161_v25 = vsel %vm4850_vm1, %v955_v23, 0  ;;  %v3383_v26 = vsel %vm4850_vm1, %v3014_v24, 0  ;;  %v3032_v27 = vld [vmem:[%s4841_s4 + $0x8] sm:$0x3]  ;;  %v3394_v31 = vld [vmem:[%s4839_s2] ss:$0 sm:$0xff] }
  0x37   : > { %3142 = vmatpush.bf16.msra.mxu2 %v1161_v25  ;;  %3143 = vmatpush.bf16.msra.mxu3 %v3383_v26  ;;  %v1745_v29 = vsel %vm4850_vm1, %v3032_v27, 0  ;;  %v3023_v32 = vld [vmem:[%s4841_s4 + $0x6] sm:$0x3]  ;;  %v3412_v40 = vld [vmem:[%s4840_s3] ss:$0 sm:$0xff]  ;;  %vm821_vm3 = vcmp.lt.s32.totalorder %v805_v42, 16 }
  0x38   : > { %v1563_v34 = vsel %vm4850_vm1, %v3023_v32, 0  ;;  %v3100_v35 = vld [vmem:[#allocation2 + $0x40] sm:$0xff]  ;;  %vm814_vm4 = vcmp.ge.s32.totalorder %v806_v44, 0  ;;  %vm822_vm5 = vcmp.lt.s32.totalorder %v806_v44, 16  ;;  %v3424_v49 = vadd.s32 4294967295, %v3406_v37  ;;  %vm3432_vm8 = vmand %vm813_vm2, %vm821_vm3 }
  0x39   : > { %v3426_v50 = vadd.s32 1, %v722_v45  ;;  %vm3439_vm9 = vmand %vm814_vm4, %vm822_vm5  ;;  %vm4851_vm10 = vcmp.lt.s32.totalorder %v3406_v37, 1  ;;  %vm784_vm11 = vcmp.lt.s32.totalorder %v3406_v37, 7  ;;  %v3453_v60 = vadd.s32 2, %v3400_v33 }
  0x3a   : > { %1170 = vmatpush.bf16.msra.mxu0 %v1161_v25  ;;  %1572 = vmatpush.bf16.msrb.mxu1 %v1563_v34  ;;  %vm839_vm13 = vcmp.ge.s32.totalorder %v3424_v49, 0  ;;  %vm1409_vm2 = vcmp.ge.s32.totalorder %v3404_v36, 0  ;;  %vm1417_vm6 = vcmp.lt.s32.totalorder %v3404_v36, 16  ;;  %v1994_v57 = vadd.s32 1, %v3404_v36 }
  0x3b   : > { %1754 = vmatpush.bf16.msrb.mxu2 %v1745_v29  ;;  %vm1237_vm14 = vcmp.lt.s32.totalorder %v3426_v50, 16  ;;  %vm3468_vm3 = vmand %vm3439_vm9, %vm839_vm13  ;;  %v807_v34 = vadd.s32 4294967295, %v3453_v60  ;;  %v3580_v2 = vadd.s32 3, %v3400_v33 }
  0x3c   : > { %vm3480_vm4 = vmand %vm3446_vm12, %vm839_vm13 }
  0x3d   : > { %vm3490_vm5 = vmand %vm3439_vm9, %vm1237_vm14 }
  0x3e   : > { %vm3508_vm7 = vmand %vm3446_vm12, %vm1237_vm14 }
  0x45   : > { %2988 = vmatmul.msk.bf16.gmra.mxu0 %vm4849_vm0, %v3092_v12 }
  0x55   : > { %2989 = vmatmul.msk.bf16.gmra.mxu0 %vm4849_vm0, %v3093_v13 }
  0x65   : > { %2990 = vmatmul.msk.bf16.gmra.mxu0 %vm4849_vm0, %v3094_v14 }
  0x75   : > { %2991 = vmatmul.msk.bf16.gmra.mxu0 %vm4849_vm0, %v3095_v15 }
  0x85   : > { %2992 = vmatmul.msk.bf16.gmra.mxu0 %vm4849_vm0, %v3096_v16 }
  0x95   : > { %2993 = vmatmul.msk.bf16.gmra.mxu0 %vm4849_vm0, %v3097_v17 }
  0xa5   : > { %2994 = vmatmul.msk.bf16.gmra.mxu0 %vm4849_vm0, %v3098_v18 }
  0xb2   : > { %v594_v22 = vpop.f32.mrf.mxu0 }
  0xb3   : > { %v648_v39 = vmul.f32 %v3394_v31, %v594_v22 }
  0xb5   : > { %2995 = vmatmul.msk.bf16.gmra.mxu0 %vm4849_vm0, %v3099_v21  ;;  %v672_v46 = vadd.f32 %v3412_v40, %v648_v39  ;;  %v3844_v39 = vadd.s32 5, %v3400_v33 }
  0xb7   : > { %v3430_v52 = vmax.f32 %v672_v46, 0.0 }
  0xb9   : > { %v1032_v61 = vsel %vm3432_vm8, %v3430_v52, 0.0 }
  0xba   : > { %v596_v28 = vpop.f32.mrf.mxu0 }
  0xbb   : > { %v649_v41 = vmul.f32 %v3394_v31, %v596_v28 }
  0xbd   : > { %v673_v47 = vadd.f32 %v3412_v40, %v649_v41 }
  0xbf   : > { %v3436_v54 = vmax.f32 %v673_v47, 0.0 }
  0xc1   : > { %v1033_v63 = vsel %vm3432_vm8, %v3436_v54, 0.0  ;;  %v733_v42 = vrot.slane %v3436_v54, 7 }
  0xc2   : > { %v599_v38 = vpop.f32.mrf.mxu0  ;;  %v1048_v12 = vpack.c.bf16 %v1033_v63, %v1032_v61 }
  0xc3   : > { %v650_v43 = vmul.f32 %v3394_v31, %v599_v38 }
  0xc5   : > { %2996 = vmatmul.msk.bf16.gmra.mxu0 %vm4849_vm0, %v3100_v35  ;;  %v674_v48 = vadd.f32 %v3412_v40, %v650_v43 }
  0xc7   : > { %v694_v56 = vmax.f32 %v674_v48, 0.0 }
  0xc9   : > { %v1034_v0 = vsel %vm3439_vm9, %v694_v56, 0.0  ;;  %v724_v1 = vrot.slane %v694_v56, 7  ;;  %v765_v3 = vrot.slane %v694_v56, 1  ;;  %v1694_v4 = vsel %vm3446_vm12, %v694_v56, 0.0 }
  0xca   : > { %v601_v51 = vpop.f32.mrf.mxu0 }
  0xcb   : > { %v651_v55 = vmul.f32 %v3394_v31, %v601_v51 }
  0xcd   : > { %v675_v58 = vadd.f32 %v3412_v40, %v651_v55 }
  0xcf   : > { %v695_v62 = vmax.f32 %v675_v58, 0.0  ;;  %v774_v58 = vrot.slane %v3436_v54, 1 }
  0xd1   : > { %v1035_v5 = vsel %vm3439_vm9, %v695_v62, 0.0  ;;  %v734_v6 = vrot.slane %v695_v62, 7  ;;  %v775_v8 = vrot.slane %v695_v62, 1  ;;  %v1695_v9 = vsel %vm3446_vm12, %v695_v62, 0.0 }
  0xd2   : > { %v604_v10 = vpop.f32.mrf.mxu0  ;;  %v1049_v11 = vpack.c.bf16 %v1035_v5, %v1034_v0  ;;  %v3495_v14 = vpack.c.bf16 %v1695_v9, %v1694_v4 }
  0xd3   : > { %v652_v15 = vmul.f32 %v3394_v31, %v604_v10  ;;  %v745_v16 = vsel %vm4851_vm10, %v724_v1, %v734_v6  ;;  %v755_v17 = vsel %vm4851_vm10, %v734_v6, %v724_v1  ;;  %v786_v18 = vsel %vm784_vm11, %v765_v3, %v775_v8 }
  0xd4   : > { %2999 = vmatmul.msk.bf16.vlgmr.msra.gmra.mxu1 %vm1058_vm15, %v1049_v11  ;;  %v933_v20 = vsel %vm3468_vm3, %v755_v17, 0.0  ;;  %v934_v21 = vsel %vm3439_vm9, %v745_v16, 0.0  ;;  %v1512_v22 = vsel %vm3480_vm4, %v755_v17, 0.0  ;;  %v1513_v23 = vsel %vm3446_vm12, %v745_v16, 0.0  ;;  %v3050_v16 = vld [vmem:[%s4841_s4 + $0xc] sm:$0x3] }
  0xd5   : > { %v676_v24 = vadd.f32 %v3412_v40, %v652_v15  ;;  %2998 = vmatmul.msk.bf16.vlgmr.msrb.gmra.mxu0 %vm1058_vm15, %v1048_v12  ;;  %v948_v25 = vpack.c.bf16 %v934_v21, %v933_v20  ;;  %v796_v27 = vsel %vm784_vm11, %v775_v8, %v765_v3  ;;  %v1292_v28 = vsel %vm3439_vm9, %v786_v18, 0.0  ;;  %vm3540_vm9 = vmand %vm1409_vm2, %vm1417_vm6 }
  0xd6   : > { %v1293_v29 = vsel %vm3490_vm5, %v796_v27, 0.0  ;;  %v1876_v30 = vsel %vm3446_vm12, %v786_v18, 0.0  ;;  %v1877_v32 = vsel %vm3508_vm7, %v796_v27, 0.0  ;;  %1350 = vmatpush.bf16.msrb.mxu0 %v3383_v26  ;;  %v3544_v41 = vpack.c.bf16 %v1513_v23, %v1512_v22  ;;  %vm3562_vm2 = vmand %vm3432_vm8, %vm839_vm13 }
  0xd7   : > { %v696_v35 = vmax.f32 %v676_v24, 0.0  ;;  %3007 = vmatmul.msk.bf16.vlgmr.msra.gmra.mxu2 %vm1058_vm15, %v948_v25  ;;  %v1307_v38 = vpack.c.bf16 %v1293_v29, %v1292_v28  ;;  %v3547_v43 = vpack.c.bf16 %v1877_v32, %v1876_v30  ;;  %v723_v26 = vrot.slane %v3430_v52, 7 }
  0xd8   : > { %vm815_vm12 = vcmp.ge.s32.totalorder %v807_v34, 0  ;;  %vm823_vm3 = vcmp.lt.s32.totalorder %v807_v34, 16  ;;  %vm2001_vm6 = vcmp.ge.s32.totalorder %v1994_v57, 0  ;;  %v808_v25 = vadd.s32 4294967295, %v3580_v2 }
  0xd9   : > { %3016 = vmatmul.msk.bf16.vlgmr.msra.gmra.mxu3 %vm1058_vm15, %v1307_v38  ;;  %v1696_v45 = vsel %vm3540_vm9, %v696_v35, 0.0  ;;  %v744_v47 = vsel %vm4851_vm10, %v723_v26, %v733_v42  ;;  %v754_v48 = vsel %vm4851_vm10, %v733_v42, %v723_v26  ;;  %vm3567_vm4 = vmand %vm815_vm12, %vm823_vm3  ;;  %v725_v0 = vrot.slane %v696_v35, 7 }
  0xda   : > { %v606_v44 = vpop.f32.mrf.mxu0  ;;  %v931_v61 = vsel %vm3562_vm2, %v754_v48, 0.0  ;;  %v932_v62 = vsel %vm3432_vm8, %v744_v47, 0.0  ;;  %v1036_v63 = vsel %vm3567_vm4, %v696_v35, 0.0  ;;  %v766_v1 = vrot.slane %v696_v35, 1  ;;  %vm3588_vm5 = vmand %vm3567_vm4, %vm839_vm13 }
  0xdb   : > { %v653_v46 = vmul.f32 %v3394_v31, %v606_v44  ;;  %v947_v8 = vpack.c.bf16 %v932_v62, %v931_v61  ;;  %vm3611_vm7 = vmand %vm3567_vm4, %vm1237_vm14  ;;  %vm2008_vm12 = vcmp.lt.s32.totalorder %v1994_v57, 16  ;;  %vm1410_vm3 = vcmp.ge.s32.totalorder %v3453_v60, 0 }
  0xdc   : > { %vm3634_vm2 = vmand %vm3540_vm9, %vm1237_vm14  ;;  %v2137_v27 = vsel %vm4850_vm1, %v3050_v16, 0  ;;  %v764_v28 = vrot.slane %v3430_v52, 1  ;;  %vm1419_vm1 = vcmp.lt.s32.totalorder %v3580_v2, 16 }
  0xdd   : > { %v677_v55 = vadd.f32 %v3412_v40, %v653_v46  ;;  %vm3651_vm0 = vmand %vm2001_vm6, %vm2008_vm12  ;;  %vm824_vm12 = vcmp.lt.s32.totalorder %v808_v25, 16  ;;  %v1995_v46 = vadd.s32 1, %v3453_v60 }
  0xde   : > { %v785_v38 = vsel %vm784_vm11, %v764_v28, %v774_v58  ;;  %v795_v42 = vsel %vm784_vm11, %v774_v58, %v764_v28  ;;  %vm1243_vm6 = vmand %vm3432_vm8, %vm1237_vm14 }
  0xdf   : > { %v697_v59 = vmax.f32 %v677_v55, 0.0  ;;  %v1290_v51 = vsel %vm3432_vm8, %v785_v38, 0.0  ;;  %v1291_v55 = vsel %vm1243_vm6, %v795_v42, 0.0  ;;  %vm2009_vm8 = vcmp.lt.s32.totalorder %v1995_v46, 16 }
  0xe0   : > { %v1306_v58 = vpack.c.bf16 %v1291_v55, %v1290_v51 }
  0xe1   : > { %v1037_v36 = vsel %vm3567_vm4, %v697_v59, 0.0  ;;  %v735_v3 = vrot.slane %v697_v59, 7  ;;  %v776_v4 = vrot.slane %v697_v59, 1  ;;  %v1697_v5 = vsel %vm3540_vm9, %v697_v59, 0.0 }
  0xe2   : > { %v609_v6 = vpop.f32.mrf.mxu0  ;;  %v1050_v7 = vpack.c.bf16 %v1037_v36, %v1036_v63  ;;  %v3594_v9 = vpack.c.bf16 %v1697_v5, %v1696_v45  ;;  %v3692_v59 = vadd.s32 4, %v3400_v33 }
  0xe3   : > { %v654_v10 = vmul.f32 %v3394_v31, %v609_v6  ;;  %v3599_v11 = vsel %vm4851_vm10, %v725_v0, %v735_v3  ;;  %v3603_v12 = vsel %vm4851_vm10, %v735_v3, %v725_v0  ;;  %v787_v13 = vsel %vm784_vm11, %v766_v1, %v776_v4 }
  0xe4   : > { %3000 = vmatmul.msk.bf16.gmra.mxu1 %vm1058_vm15, %v1050_v7  ;;  %v935_v17 = vsel %vm3588_vm5, %v3603_v12, 0.0  ;;  %v936_v18 = vsel %vm3567_vm4, %v3599_v11, 0.0  ;;  %v797_v21 = vsel %vm784_vm11, %v776_v4, %v766_v1  ;;  %vm1418_vm5 = vcmp.lt.s32.totalorder %v3453_v60, 16 }
  0xe5   : > { %v678_v19 = vadd.f32 %v3412_v40, %v654_v10  ;;  %3006 = vmatmul.msk.bf16.vlgmr.msra.gmra.mxu0 %vm1058_vm15, %v947_v8  ;;  %v949_v20 = vpack.c.bf16 %v936_v18, %v935_v17  ;;  %v1294_v23 = vsel %vm3567_vm4, %v787_v13, 0.0  ;;  %v1295_v24 = vsel %vm3611_vm7, %v797_v21, 0.0  ;;  %vm3661_vm4 = vmand %vm1410_vm3, %vm1418_vm5 }
  0xe6   : > { %v1308_v30 = vpack.c.bf16 %v1295_v24, %v1294_v23  ;;  %2146 = vmatpush.bf16.msra.mxu0 %v2137_v27  ;;  %v1878_v34 = vsel %vm3540_vm9, %v787_v13, 0.0  ;;  %v1879_v35 = vsel %vm3634_vm2, %v797_v21, 0.0  ;;  %vm816_vm7 = vcmp.ge.s32.totalorder %v808_v25, 0 }
  0xe7   : > { %v3646_v29 = vmax.f32 %v678_v19, 0.0  ;;  %3008 = vmatmul.msk.bf16.gmra.mxu2 %vm1058_vm15, %v949_v20  ;;  %v3674_v44 = vpack.c.bf16 %v1879_v35, %v1878_v34  ;;  %vm3687_vm3 = vmand %vm816_vm7, %vm824_vm12  ;;  %vm2002_vm2 = vcmp.ge.s32.totalorder %v1995_v46, 0  ;;  %vm1411_vm7 = vcmp.ge.s32.totalorder %v3580_v2, 0 }
  0xe8   : > { %vm3705_vm5 = vmand %vm3687_vm3, %vm839_vm13  ;;  %v809_v28 = vadd.s32 4294967295, %v3692_v59 }
  0xe9   : > { %3017 = vmatmul.msk.bf16.gmra.mxu3 %vm1058_vm15, %v1308_v30  ;;  %v1698_v47 = vsel %vm3661_vm4, %v3646_v29, 0.0  ;;  %v2260_v48 = vsel %vm3651_vm0, %v3646_v29, 0.0  ;;  %v1038_v61 = vsel %vm3687_vm3, %v3646_v29, 0.0  ;;  %v726_v53 = vrot.slane %v3646_v29, 7  ;;  %vm3715_vm6 = vmand %vm3687_vm3, %vm1237_vm14 }
  0xea   : > { %v611_v26 = vpop.f32.mrf.mxu0  ;;  %v767_v62 = vrot.slane %v3646_v29, 1  ;;  %vm3739_vm12 = vmand %vm3661_vm4, %vm839_vm13 }
  0xeb   : > { %v655_v45 = vmul.f32 %v3394_v31, %v611_v26 }
  0xed   : > { %v679_v56 = vadd.f32 %v3412_v40, %v655_v45 }
  0xef   : > { %v699_v60 = vmax.f32 %v679_v56, 0.0 }
  0xf1   : > { %v1039_v63 = vsel %vm3687_vm3, %v699_v60, 0.0  ;;  %v736_v0 = vrot.slane %v699_v60, 7  ;;  %v777_v36 = vrot.slane %v699_v60, 1  ;;  %v1699_v3 = vsel %vm3661_vm4, %v699_v60, 0.0 }
  0xf2   : > { %v614_v54 = vpop.f32.mrf.mxu0  ;;  %v1051_v4 = vpack.c.bf16 %v1039_v63, %v1038_v61  ;;  %v3719_v6 = vpack.c.bf16 %v1699_v3, %v1698_v47  ;;  %v2261_v7 = vsel %vm3651_vm0, %v699_v60, 0.0  ;;  %v1996_v47 = vadd.s32 1, %v3580_v2 }
  0xf3   : > { %v656_v8 = vmul.f32 %v3394_v31, %v614_v54  ;;  %v3727_v10 = vsel %vm4851_vm10, %v726_v53, %v736_v0  ;;  %v3731_v13 = vsel %vm4851_vm10, %v736_v0, %v726_v53  ;;  %v788_v15 = vsel %vm784_vm11, %v767_v62, %v777_v36 }
  0xf4   : > { %3001 = vmatmul.msk.bf16.gmra.mxu1 %vm1058_vm15, %v1051_v4  ;;  %v937_v17 = vsel %vm3705_vm5, %v3731_v13, 0.0  ;;  %v938_v18 = vsel %vm3687_vm3, %v3727_v10, 0.0  ;;  %v798_v19 = vsel %vm784_vm11, %v777_v36, %v767_v62  ;;  %v1296_v20 = vsel %vm3687_vm3, %v788_v15, 0.0  ;;  %vm3762_vm5 = vmand %vm3661_vm4, %vm1237_vm14 }
  0xf5   : > { %v680_v21 = vadd.f32 %v3412_v40, %v656_v8  ;;  %3015 = vmatmul.msk.bf16.vlgmr.msrb.gmra.mxu0 %vm1058_vm15, %v1306_v58  ;;  %v950_v22 = vpack.c.bf16 %v938_v18, %v937_v17  ;;  %v1297_v23 = vsel %vm3715_vm6, %v798_v19, 0.0  ;;  %vm3771_vm3 = vmand %vm3540_vm9, %vm839_vm13  ;;  %v1516_v29 = vsel %vm3739_vm12, %v3731_v13, 0.0 }
  0xf6   : > { %v1309_v27 = vpack.c.bf16 %v1297_v23, %v1296_v20  ;;  %vm3784_vm6 = vmand %vm2002_vm2, %vm2009_vm8  ;;  %v1517_v35 = vsel %vm3661_vm4, %v3727_v10, 0.0  ;;  %v1880_v42 = vsel %vm3661_vm4, %v788_v15, 0.0  ;;  %v1881_v26 = vsel %vm3762_vm5, %v798_v19, 0.0 }
  0xf7   : > { %v3779_v30 = vmax.f32 %v680_v21, 0.0  ;;  %3009 = vmatmul.msk.bf16.gmra.mxu2 %vm1058_vm15, %v950_v22  ;;  %v3791_v38 = vpack.c.bf16 %v1517_v35, %v1516_v29  ;;  %vm3799_vm12 = vmand %vm1411_vm7, %vm1419_vm1  ;;  %vm817_vm4 = vcmp.ge.s32.totalorder %v809_v28, 0  ;;  %vm825_vm8 = vcmp.lt.s32.totalorder %v809_v28, 16 }
  0xf8   : > { %vm3808_vm2 = vmand %vm3651_vm0, %vm1237_vm14  ;;  %v3813_v51 = vpack.c.bf16 %v1881_v26, %v1880_v42  ;;  %v3819_v57 = vpack.c.bf16 %v2261_v7, %v2260_v48  ;;  %v2428_v58 = vsel %vm3651_vm0, %v788_v15, 0.0  ;;  %v1514_v60 = vsel %vm3771_vm3, %v3603_v12, 0.0 }
  0xf9   : > { %3018 = vmatmul.msk.bf16.gmra.mxu3 %vm1058_vm15, %v1309_v27  ;;  %v1700_v56 = vsel %vm3799_vm12, %v3779_v30, 0.0  ;;  %v1515_v2 = vsel %vm3540_vm9, %v3599_v11, 0.0  ;;  %v2429_v61 = vsel %vm3808_vm2, %v798_v19, 0.0  ;;  %v2262_v53 = vsel %vm3784_vm6, %v3779_v30, 0.0  ;;  %vm3835_vm1 = vmand %vm817_vm4, %vm825_vm8 }
  0xfa   : > { %v616_v52 = vpop.f32.mrf.mxu0  ;;  %v3839_v63 = vpack.c.bf16 %v2429_v61, %v2428_v58  ;;  %v3841_v12 = vpack.c.bf16 %v1515_v2, %v1514_v60  ;;  %vm2003_vm9 = vcmp.ge.s32.totalorder %v1996_v47, 0  ;;  %v1040_v11 = vsel %vm3835_vm1, %v3779_v30, 0.0  ;;  %vm3857_vm5 = vmand %vm3835_vm1, %vm839_vm13 }
  0xfb   : > { %v657_v55 = vmul.f32 %v3394_v31, %v616_v52  ;;  %v727_v1 = vrot.slane %v3779_v30, 7  ;;  %v768_v36 = vrot.slane %v3779_v30, 1  ;;  %vm2010_vm7 = vcmp.lt.s32.totalorder %v1996_v47, 16  ;;  %vm3867_vm3 = vmand %vm3835_vm1, %vm1237_vm14 }
  0xfc   : > { %vm1412_vm2 = vcmp.ge.s32.totalorder %v3692_v59, 0  ;;  %vm3891_vm4 = vmand %vm3799_vm12, %vm839_vm13  ;;  %v810_v26 = vadd.s32 4294967295, %v3844_v39  ;;  %v2093_v4 = vsel %vm3651_vm0, %v3727_v10, 0.0 }
  0xfd   : > { %v681_v48 = vadd.f32 %v3412_v40, %v657_v55  ;;  %vm1835_vm8 = vmand %vm3799_vm12, %vm1237_vm14 }
  0xff   : > { %v701_v0 = vmax.f32 %v681_v48, 0.0 }
 0x101   : > { %v1041_v3 = vsel %vm3835_vm1, %v701_v0, 0.0  ;;  %v737_v54 = vrot.slane %v701_v0, 7  ;;  %v778_v5 = vrot.slane %v701_v0, 1  ;;  %v1701_v7 = vsel %vm3799_vm12, %v701_v0, 0.0 }
 0x102   : > { %v619_v8 = vpop.f32.mrf.mxu0  ;;  %v1052_v15 = vpack.c.bf16 %v1041_v3, %v1040_v11  ;;  %v3871_v17 = vpack.c.bf16 %v1701_v7, %v1700_v56  ;;  %v2263_v18 = vsel %vm3784_vm6, %v701_v0, 0.0  ;;  %v1997_v0 = vadd.s32 1, %v3692_v59 }
 0x103   : > { %v658_v19 = vmul.f32 %v3394_v31, %v619_v8  ;;  %v3879_v20 = vsel %vm4851_vm10, %v727_v1, %v737_v54  ;;  %v3883_v21 = vsel %vm4851_vm10, %v737_v54, %v727_v1  ;;  %v789_v22 = vsel %vm784_vm11, %v768_v36, %v778_v5 }
 0x104   : > { %3002 = vmatmul.msk.bf16.gmra.mxu1 %vm1058_vm15, %v1052_v15  ;;  %v939_v24 = vsel %vm3857_vm5, %v3883_v21, 0.0  ;;  %v940_v25 = vsel %vm3835_vm1, %v3879_v20, 0.0  ;;  %v799_v27 = vsel %vm784_vm11, %v778_v5, %v768_v36  ;;  %v1298_v28 = vsel %vm3835_vm1, %v789_v22, 0.0  ;;  %vm3921_vm1 = vmand %vm3651_vm0, %vm839_vm13 }
 0x105   : > { %v682_v29 = vadd.f32 %v3412_v40, %v658_v19  ;;  %3051 = vmatmul.msk.bf16.vlgmr.msra.gmra.mxu0 %vm1058_vm15, %v3841_v12  ;;  %v951_v30 = vpack.c.bf16 %v940_v25, %v939_v24  ;;  %v1299_v35 = vsel %vm3867_vm3, %v799_v27, 0.0  ;;  %vm1420_vm5 = vcmp.lt.s32.totalorder %v3692_v59, 16  ;;  %vm3933_vm3 = vmand %vm2003_vm9, %vm2010_vm7 }
 0x106   : > { %v1310_v42 = vpack.c.bf16 %v1299_v35, %v1298_v28  ;;  %v1518_v52 = vsel %vm3891_vm4, %v3883_v21, 0.0  ;;  %v1519_v58 = vsel %vm3799_vm12, %v3879_v20, 0.0  ;;  %v1882_v60 = vsel %vm3799_vm12, %v789_v22, 0.0  ;;  %vm3946_vm4 = vmand %vm1412_vm2, %vm1420_vm5 }
 0x107   : > { %v3928_v55 = vmax.f32 %v682_v29, 0.0  ;;  %3010 = vmatmul.msk.bf16.gmra.mxu2 %vm1058_vm15, %v951_v30  ;;  %v3942_v2 = vpack.c.bf16 %v1519_v58, %v1518_v52  ;;  %v1883_v61 = vsel %vm1835_vm8, %v799_v27, 0.0  ;;  %vm3957_vm9 = vmand %vm3784_vm6, %vm1237_vm14  ;;  %vm818_vm12 = vcmp.ge.s32.totalorder %v810_v26, 0 }
 0x108   : > { %v3951_v47 = vpack.c.bf16 %v1883_v61, %v1882_v60  ;;  %vm826_vm7 = vcmp.lt.s32.totalorder %v810_v26, 16  ;;  %v3966_v36 = vpack.c.bf16 %v2263_v18, %v2262_v53  ;;  %v2430_v3 = vsel %vm3784_vm6, %v789_v22, 0.0 }
 0x109   : > { %3019 = vmatmul.msk.bf16.gmra.mxu3 %vm1058_vm15, %v1310_v42  ;;  %v1702_v1 = vsel %vm3946_vm4, %v3928_v55, 0.0  ;;  %v2092_v54 = vsel %vm3921_vm1, %v3731_v13, 0.0  ;;  %v2431_v59 = vsel %vm3957_vm9, %v799_v27, 0.0  ;;  %v2264_v5 = vsel %vm3933_vm3, %v3928_v55, 0.0  ;;  %vm3982_vm2 = vmand %vm818_vm12, %vm826_vm7 }
 0x10a   : > { %v621_v62 = vpop.f32.mrf.mxu0  ;;  %v3986_v8 = vpack.c.bf16 %v2431_v59, %v2430_v3  ;;  %v3989_v13 = vadd.s32 6, %v3400_v33  ;;  %v2106_v10 = vpack.c.bf16 %v2093_v4, %v2092_v54  ;;  %vm2004_vm0 = vcmp.ge.s32.totalorder %v1997_v0, 0  ;;  %vm4003_vm1 = vmand %vm3982_vm2, %vm839_vm13 }
 0x10b   : > { %v659_v11 = vmul.f32 %v3394_v31, %v621_v62  ;;  %vm2011_vm8 = vcmp.lt.s32.totalorder %v1997_v0, 16  ;;  %v1042_v15 = vsel %vm3982_vm2, %v3928_v55, 0.0  ;;  %v728_v16 = vrot.slane %v3928_v55, 7  ;;  %vm4013_vm9 = vmand %vm3982_vm2, %vm1237_vm14 }
 0x10c   : > { %v769_v18 = vrot.slane %v3928_v55, 1  ;;  %vm1413_vm5 = vcmp.ge.s32.totalorder %v3844_v39, 0  ;;  %vm1421_vm12 = vcmp.lt.s32.totalorder %v3844_v39, 16  ;;  %vm4037_vm7 = vmand %vm3946_vm4, %vm839_vm13  ;;  %v811_v54 = vadd.s32 4294967295, %v3989_v13 }
 0x10d   : > { %v683_v53 = vadd.f32 %v3412_v40, %v659_v11 }
 0x10f   : > { %v703_v32 = vmax.f32 %v683_v53, 0.0 }
 0x111   : > { %v1043_v19 = vsel %vm3982_vm2, %v703_v32, 0.0  ;;  %v738_v22 = vrot.slane %v703_v32, 7  ;;  %v779_v24 = vrot.slane %v703_v32, 1  ;;  %v1703_v25 = vsel %vm3946_vm4, %v703_v32, 0.0 }
 0x112   : > { %v624_v27 = vpop.f32.mrf.mxu0  ;;  %v1053_v28 = vpack.c.bf16 %v1043_v19, %v1042_v15  ;;  %v4017_v30 = vpack.c.bf16 %v1703_v25, %v1702_v1  ;;  %v2265_v35 = vsel %vm3933_vm3, %v703_v32, 0.0 }
 0x113   : > { %v660_v42 = vmul.f32 %v3394_v31, %v624_v27  ;;  %v4025_v26 = vsel %vm4851_vm10, %v728_v16, %v738_v22  ;;  %v4029_v46 = vsel %vm4851_vm10, %v738_v22, %v728_v16  ;;  %v790_v52 = vsel %vm784_vm11, %v769_v18, %v779_v24  ;;  %vm4056_vm10 = vmand %vm3946_vm4, %vm1237_vm14  ;;  %v3068_v16 = vld [vmem:[%s4841_s4 + $0x10] sm:$0x3] }
 0x114   : > { %3003 = vmatmul.msk.bf16.gmra.mxu1 %vm1058_vm15, %v1053_v28  ;;  %v941_v58 = vsel %vm4003_vm1, %v4029_v46, 0.0  ;;  %v942_v60 = vsel %vm3982_vm2, %v4025_v26, 0.0  ;;  %v800_v61 = vsel %vm784_vm11, %v779_v24, %v769_v18  ;;  %v1300_v45 = vsel %vm3982_vm2, %v790_v52, 0.0  ;;  %vm4069_vm2 = vmand %vm3933_vm3, %vm1237_vm14 }
 0x115   : > { %v684_v11 = vadd.f32 %v3412_v40, %v660_v42  ;;  %3052 = vmatmul.msk.bf16.gmra.mxu0 %vm1058_vm15, %v2106_v10  ;;  %v952_v1 = vpack.c.bf16 %v942_v60, %v941_v58  ;;  %v1301_v3 = vsel %vm4013_vm9, %v800_v61, 0.0  ;;  %vm4075_vm1 = vmand %vm2004_vm0, %vm2011_vm8  ;;  %v1520_v7 = vsel %vm4037_vm7, %v4029_v46, 0.0 }
 0x116   : > { %v1311_v59 = vpack.c.bf16 %v1301_v3, %v1300_v45  ;;  %v1521_v32 = vsel %vm3946_vm4, %v4025_v26, 0.0  ;;  %v1884_v0 = vsel %vm3946_vm4, %v790_v52, 0.0  ;;  %vm4096_vm0 = vmand %vm1413_vm5, %vm1421_vm12  ;;  %v1885_v18 = vsel %vm4056_vm10, %v800_v61, 0.0 }
 0x117   : > { %v4085_v10 = vmax.f32 %v684_v11, 0.0  ;;  %3011 = vmatmul.msk.bf16.gmra.mxu2 %vm1058_vm15, %v952_v1  ;;  %v4088_v15 = vpack.c.bf16 %v1521_v32, %v1520_v7  ;;  %v4102_v19 = vpack.c.bf16 %v2265_v35, %v2264_v5  ;;  %v2432_v22 = vsel %vm3933_vm3, %v790_v52, 0.0  ;;  %vm2038_vm8 = vmand %vm3784_vm6, %vm839_vm13 }
 0x118   : > { %v2433_v48 = vsel %vm4069_vm2, %v800_v61, 0.0  ;;  %vm819_vm4 = vcmp.ge.s32.totalorder %v811_v54, 0  ;;  %v4113_v23 = vpack.c.bf16 %v1885_v18, %v1884_v0  ;;  %vm827_vm10 = vcmp.lt.s32.totalorder %v811_v54, 16  ;;  %vm4182_vm2 = vmand %vm4096_vm0, %vm839_vm13 }
 0x119   : > { %3020 = vmatmul.msk.bf16.gmra.mxu3 %vm1058_vm15, %v1311_v59  ;;  %v1704_v5 = vsel %vm4096_vm0, %v4085_v10, 0.0  ;;  %v4118_v25 = vpack.c.bf16 %v2433_v48, %v2432_v22  ;;  %v2266_v27 = vsel %vm4075_vm1, %v4085_v10, 0.0  ;;  %v2094_v29 = vsel %vm2038_vm8, %v3883_v21, 0.0  ;;  %vm4132_vm5 = vmand %vm819_vm4, %vm827_vm10 }
 0x11a   : > { %v626_v24 = vpop.f32.mrf.mxu0  ;;  %v2095_v35 = vsel %vm3784_vm6, %v3879_v20, 0.0  ;;  %v4129_v42 = vadd.s32 7, %v3400_v33  ;;  %v1044_v61 = vsel %vm4132_vm5, %v4085_v10, 0.0  ;;  %v729_v21 = vrot.slane %v4085_v10, 7  ;;  %vm4148_vm6 = vmand %vm4132_vm5, %vm839_vm13 }
 0x11b   : > { %v661_v28 = vmul.f32 %v3394_v31, %v626_v24  ;;  %v2107_v60 = vpack.c.bf16 %v2095_v35, %v2094_v29  ;;  %v770_v34 = vrot.slane %v4085_v10, 1  ;;  %vm4158_vm9 = vmand %vm4132_vm5, %vm1237_vm14  ;;  %v1998_v59 = vadd.s32 1, %v3844_v39  ;;  %v3041_v29 = vld [vmem:[%s4841_s4 + $0xa] sm:$0x3] }
 0x11c   : > { %v812_v20 = vadd.s32 4294967295, %v4129_v42  ;;  %vm4941_vm12 = vcmp.lt.s32.totalorder %v3406_v37, 1  ;;  %vm4945_vm4 = vcmask 1041408   ;;  %vm4209_vm8 = vmand %vm4096_vm0, %vm1237_vm14 }
 0x11d   : > { %v685_v52 = vadd.f32 %v3412_v40, %v661_v28  ;;  %vm4942_vm7 = vmmov %vm4941_vm12  ;;  %vm2005_vm10 = vcmp.ge.s32.totalorder %v1998_v59, 0 }
 0x11f   : > { %v705_v58 = vmax.f32 %v685_v52, 0.0 }
 0x121   : > { %v1045_v33 = vsel %vm4132_vm5, %v705_v58, 0.0  ;;  %v739_v45 = vrot.slane %v705_v58, 7  ;;  %v780_v11 = vrot.slane %v705_v58, 1  ;;  %v1705_v1 = vsel %vm4096_vm0, %v705_v58, 0.0 }
 0x122   : > { %v629_v3 = vpop.f32.mrf.mxu0  ;;  %v1054_v54 = vpack.c.bf16 %v1045_v33, %v1044_v61  ;;  %v4163_v7 = vpack.c.bf16 %v1705_v1, %v1704_v5  ;;  %v2267_v32 = vsel %vm4075_vm1, %v705_v58, 0.0  ;;  %v1927_v61 = vsel %vm4945_vm4, %v3041_v29, 0 }
 0x123   : > { %v662_v10 = vmul.f32 %v3394_v31, %v629_v3  ;;  %v4170_v0 = vsel %vm4941_vm12, %v729_v21, %v739_v45  ;;  %v4174_v18 = vsel %vm4942_vm7, %v739_v45, %v729_v21  ;;  %v791_v22 = vsel %vm784_vm11, %v770_v34, %v780_v11  ;;  %1936 = vmatpush.bf16.msrb.mxu3 %v1927_v61 }
 0x124   : > { %3004 = vmatmul.msk.bf16.gmra.mxu1 %vm1058_vm15, %v1054_v54  ;;  %v943_v48 = vsel %vm4148_vm6, %v4174_v18, 0.0  ;;  %v944_v24 = vsel %vm4132_vm5, %v4170_v0, 0.0  ;;  %v801_v5 = vsel %vm784_vm11, %v780_v11, %v770_v34  ;;  %v1302_v28 = vsel %vm4132_vm5, %v791_v22, 0.0  ;;  %vm4228_vm6 = vmand %vm4075_vm1, %vm1237_vm14 }
 0x125   : > { %v686_v35 = vadd.f32 %v3412_v40, %v662_v10  ;;  %3053 = vmatmul.msk.bf16.gmra.mxu0 %vm1058_vm15, %v2107_v60  ;;  %v953_v52 = vpack.c.bf16 %v944_v24, %v943_v48  ;;  %v1303_v58 = vsel %vm4158_vm9, %v801_v5, 0.0  ;;  %vm2012_vm5 = vcmp.lt.s32.totalorder %v1998_v59, 16 }
 0x126   : > { %v1312_v21 = vpack.c.bf16 %v1303_v58, %v1302_v28  ;;  %v1522_v60 = vsel %vm4182_vm2, %v4174_v18, 0.0  ;;  %v1523_v33 = vsel %vm4096_vm0, %v4170_v0, 0.0  ;;  %v1886_v45 = vsel %vm4096_vm0, %v791_v22, 0.0  ;;  %vm4246_vm12 = vmand %vm2005_vm10, %vm2012_vm5 }
 0x127   : > { %v4216_v34 = vmax.f32 %v686_v35, 0.0  ;;  %3012 = vmatmul.msk.bf16.gmra.mxu2 %vm1058_vm15, %v953_v52  ;;  %v4232_v11 = vpack.c.bf16 %v1523_v33, %v1522_v60  ;;  %v1887_v1 = vsel %vm4209_vm8, %v801_v5, 0.0  ;;  %v4236_v3 = vpack.c.bf16 %v2267_v32, %v2266_v27  ;;  %vm4952_vm2 = vmmov %vm4945_vm4 }
 0x128   : > { %v2434_v54 = vsel %vm4075_vm1, %v791_v22, 0.0  ;;  %vm820_vm0 = vcmp.ge.s32.totalorder %v812_v20, 0  ;;  %vm828_vm9 = vcmp.lt.s32.totalorder %v812_v20, 16  ;;  %vm1414_vm7 = vcmp.ge.s32.totalorder %v3989_v13, 0  ;;  %vm4262_vm8 = vmand %vm3933_vm3, %vm839_vm13 }
 0x129   : > { %3021 = vmatmul.msk.bf16.gmra.mxu3 %vm1058_vm15, %v1312_v21  ;;  %v2473_v32 = vsel %vm4952_vm2, %v3068_v16, 0  ;;  %v4252_v10 = vpack.c.bf16 %v1887_v1, %v1886_v45  ;;  %vm1422_vm4 = vcmp.lt.s32.totalorder %v3989_v13, 16  ;;  %v2435_v20 = vsel %vm4228_vm6, %v801_v5, 0.0  ;;  %vm4268_vm10 = vmand %vm820_vm0, %vm828_vm9  ;;  %v3059_v21 = vld [vmem:[%s4841_s4 + $0xe] sm:$0x3] }
 0x12a   : > { %v631_v27 = vpop.f32.mrf.mxu0  ;;  %2482 = vmatpush.bf16.msra.mxu2 %v2473_v32  ;;  %v4266_v39 = vpack.c.bf16 %v2435_v20, %v2434_v54  ;;  %v2268_v24 = vsel %vm4246_vm12, %v4216_v34, 0.0  ;;  %vm4276_vm5 = vmand %vm1414_vm7, %vm1422_vm4  ;;  %v2096_v29 = vsel %vm4262_vm8, %v4029_v46, 0.0  ;;  %v2097_v35 = vsel %vm3933_vm3, %v4025_v26, 0.0 }
 0x12b   : > { %v663_v22 = vmul.f32 %v3394_v31, %v631_v27  ;;  %v1046_v52 = vsel %vm4268_vm10, %v4216_v34, 0.0  ;;  %v730_v58 = vrot.slane %v4216_v34, 7  ;;  %v1706_v61 = vsel %vm4276_vm5, %v4216_v34, 0.0  ;;  %vm4300_vm3 = vmand %vm4268_vm10, %vm839_vm13 }
 0x12c   : > { %vm4313_vm6 = vmand %vm4268_vm10, %vm1237_vm14  ;;  %v2108_v54 = vpack.c.bf16 %v2097_v35, %v2096_v29  ;;  %vm4964_vm9 = vcmp.lt.s32.totalorder %v3406_v37, 1 }
 0x12d   : > { %v687_v31 = vadd.f32 %v3412_v40, %v663_v22  ;;  %v771_v40 = vrot.slane %v4216_v34, 1  ;;  %vm4963_vm0 = vmmov %vm4952_vm2 }
 0x12e   : > { %v2305_v45 = vsel %vm4963_vm0, %v3059_v21, 0  ;;  %vm4965_vm7 = vmmov %vm4964_vm9 }
 0x12f   : > { %v707_v28 = vmax.f32 %v687_v31, 0.0  ;;  %2314 = vmatpush.bf16.msra.mxu1 %v2305_v45  ;;  %vm1460_vm2 = vmand %vm4276_vm5, %vm839_vm13 }
 0x130   : > { %vm4345_vm4 = vmand %vm4276_vm5, %vm1237_vm14 }
 0x131   : > { %v1047_v55 = vsel %vm4268_vm10, %v707_v28, 0.0  ;;  %v740_v46 = vrot.slane %v707_v28, 7  ;;  %v781_v26 = vrot.slane %v707_v28, 1  ;;  %v1707_v60 = vsel %vm4276_vm5, %v707_v28, 0.0  ;;  %vm2395_vm8 = vmand %vm4246_vm12, %vm1237_vm14 }
 0x132   : > { %v1055_v34 = vpack.c.bf16 %v1047_v55, %v1046_v52  ;;  %v4318_v62 = vpack.c.bf16 %v1707_v60, %v1706_v61  ;;  %v2269_v1 = vsel %vm4246_vm12, %v707_v28, 0.0  ;;  %v634_v28 = vpop.f32.mrf.mxu0 }
 0x133   : > { %v751_v16 = vsel %vm4964_vm9, %v730_v58, %v740_v46  ;;  %v761_v27 = vsel %vm4965_vm7, %v740_v46, %v730_v58  ;;  %v792_v32 = vsel %vm784_vm11, %v771_v40, %v781_v26  ;;  %v802_v59 = vsel %vm784_vm11, %v781_v26, %v771_v40 }
 0x134   : > { %3005 = vmatmul.msk.bf16.gmra.mxu1 %vm1058_vm15, %v1055_v34  ;;  %v945_v20 = vsel %vm4300_vm3, %v761_v27, 0.0  ;;  %v946_v22 = vsel %vm4268_vm10, %v751_v16, 0.0  ;;  %v1304_v31 = vsel %vm4268_vm10, %v792_v32, 0.0  ;;  %v1305_v35 = vsel %vm4313_vm6, %v802_v59, 0.0  ;;  %vm2042_vm10 = vmand %vm4075_vm1, %vm839_vm13 }
 0x135   : > { %3054 = vmatmul.msk.bf16.gmra.mxu0 %vm1058_vm15, %v2108_v54  ;;  %v954_v29 = vpack.c.bf16 %v946_v22, %v945_v20  ;;  %v1313_v48 = vpack.c.bf16 %v1305_v35, %v1304_v31  ;;  %v1524_v52 = vsel %vm1460_vm2, %v761_v27, 0.0  ;;  %v1525_v58 = vsel %vm4276_vm5, %v751_v16, 0.0  ;;  %vm4970_vm6 = vmmov %vm4965_vm7 }
 0x136   : > { %v4359_v40 = vpack.c.bf16 %v1525_v58, %v1524_v52  ;;  %v1888_v61 = vsel %vm4276_vm5, %v792_v32, 0.0  ;;  %v1889_v55 = vsel %vm4345_vm4, %v802_v59, 0.0  ;;  %v4365_v46 = vpack.c.bf16 %v2269_v1, %v2268_v24  ;;  %vm2044_vm5 = vmand %vm4246_vm12, %vm839_vm13 }
 0x137   : > { %3013 = vmatmul.msk.bf16.gmra.mxu2 %vm1058_vm15, %v954_v29  ;;  %v2436_v56 = vsel %vm4246_vm12, %v792_v32, 0.0  ;;  %v2437_v26 = vsel %vm2395_vm8, %v802_v59, 0.0  ;;  %v4370_v21 = vpack.c.bf16 %v1889_v55, %v1888_v61  ;;  %v2098_v5 = vsel %vm2042_vm10, %v4174_v18, 0.0  ;;  %v3190_v61 = vld [vmem:[%s4839_s2] ss:$0 sm:$0xff]  ;;  %vm4971_vm0 = vmmov %vm4970_vm6 }
 0x138   : > { %v4372_v60 = vpack.c.bf16 %v2437_v26, %v2436_v56  ;;  %v2099_v24 = vsel %vm4075_vm1, %v4170_v0, 0.0  ;;  %v2100_v18 = vsel %vm2044_vm5, %v761_v27, 0.0  ;;  %v2101_v53 = vsel %vm4246_vm12, %v751_v16, 0.0  ;;  %vm4974_vm10 = vmmov %vm4971_vm0 }
 0x139   : > { %3022 = vmatmul.msk.bf16.gmra.mxu3 %vm1058_vm15, %v1313_v48  ;;  %v2109_v34 = vpack.c.bf16 %v2099_v24, %v2098_v5  ;;  %v2110_v33 = vpack.c.bf16 %v2101_v53, %v2100_v18  ;;  %v664_v55 = vmul.f32 %v3190_v61, %v634_v28  ;;  %vm4975_vm5 = vmmov %vm4971_vm0 }
 0x144   : > { %3024 = vmatmul.msk.bf16.vlgmr.msrb.gmra.mxu1 %vm1058_vm15, %v3544_v41 }
 0x145   : > { %3055 = vmatmul.msk.bf16.gmra.mxu0 %vm1058_vm15, %v2109_v34 }
 0x147   : > { %3033 = vmatmul.msk.bf16.vlgmr.msrb.gmra.mxu2 %vm1058_vm15, %v3495_v14 }
 0x149   : > { %3042 = vmatmul.msk.bf16.vlgmr.msrb.gmra.mxu3 %vm1058_vm15, %v3547_v43 }
 0x151   : > { %v1101_v0 = vpop.f32.mrf.mxu1 }
 0x154   : > { %3025 = vmatmul.msk.bf16.gmra.mxu1 %vm1058_vm15, %v3841_v12 }
 0x155   : > { %3056 = vmatmul.msk.bf16.gmra.mxu0 %vm1058_vm15, %v2110_v33 }
 0x157   : > { %3034 = vmatmul.msk.bf16.gmra.mxu2 %vm1058_vm15, %v3594_v9 }
 0x159   : > { %3043 = vmatmul.msk.bf16.gmra.mxu3 %vm1058_vm15, %v3674_v44  ;;  %v1103_v14 = vpop.f32.mrf.mxu1 }
 0x15a   : > { %v1177_v41 = vpop.f32.mrf.mxu2 }
 0x15b   : > { %v1178_v43 = vadd.f32 %v1177_v41, %v1101_v0 }
 0x15c   : > { %v1357_v45 = vpop.f32.mrf.mxu3 }
 0x15d   : > { %v4402_v1 = vadd.f32 %v1357_v45, %v1178_v43 }
 0x161   : > { %v1106_v4 = vpop.f32.mrf.mxu1 }
 0x162   : > { %v1179_v54 = vpop.f32.mrf.mxu2 }
 0x163   : > { %v1180_v16 = vadd.f32 %v1179_v54, %v1103_v14  ;;  %v1999_v54 = vadd.s32 1, %v3989_v13 }
 0x164   : > { %v1359_v27 = vpop.f32.mrf.mxu3  ;;  %3026 = vmatmul.msk.bf16.gmra.mxu1 %vm1058_vm15, %v3791_v38 }
 0x165   : > { %v4406_v12 = vadd.f32 %v1359_v27, %v1180_v16  ;;  %vm2006_vm1 = vcmp.ge.s32.totalorder %v1999_v54, 0  ;;  %vm2013_vm12 = vcmp.lt.s32.totalorder %v1999_v54, 16 }
 0x166   : > { %vm4445_vm3 = vmand %vm2006_vm1, %vm2013_vm12  ;;  %vm1415_vm12 = vcmp.ge.s32.totalorder %v4129_v42, 0 }
 0x167   : > { %3035 = vmatmul.msk.bf16.gmra.mxu2 %vm1058_vm15, %v3719_v6  ;;  %vm2046_vm9 = vmand %vm4445_vm3, %vm839_vm13 }
 0x168   : > { %vm2397_vm7 = vmand %vm4445_vm3, %vm1237_vm14 }
 0x169   : > { %3044 = vmatmul.msk.bf16.gmra.mxu3 %vm1058_vm15, %v3813_v51  ;;  %v1108_v32 = vpop.f32.mrf.mxu1  ;;  %v636_v51 = vpop.f32.mrf.mxu0 }
 0x16a   : > { %v1182_v20 = vpop.f32.mrf.mxu2  ;;  %v665_v56 = vmul.f32 %v3190_v61, %v636_v51 }
 0x16b   : > { %v1183_v22 = vadd.f32 %v1182_v20, %v1106_v4 }
 0x16c   : > { %v1362_v59 = vpop.f32.mrf.mxu3 }
 0x16d   : > { %v4412_v31 = vadd.f32 %v1362_v59, %v1183_v22 }
 0x171   : > { %v1111_v29 = vpop.f32.mrf.mxu1  ;;  %v639_v43 = vpop.f32.mrf.mxu0 }
 0x172   : > { %v1184_v35 = vpop.f32.mrf.mxu2 }
 0x173   : > { %v1185_v48 = vadd.f32 %v1184_v35, %v1108_v32 }
 0x174   : > { %v1364_v52 = vpop.f32.mrf.mxu3  ;;  %3027 = vmatmul.msk.bf16.gmra.mxu1 %vm1058_vm15, %v3942_v2 }
 0x175   : > { %v4416_v38 = vadd.f32 %v1364_v52, %v1185_v48 }
 0x177   : > { %3036 = vmatmul.msk.bf16.gmra.mxu2 %vm1058_vm15, %v3871_v17  ;;  %v3191_v17 = vld [vmem:[%s4840_s3] ss:$0 sm:$0xff] }
 0x178   : > { %v688_v24 = vadd.f32 %v3191_v17, %v664_v55  ;;  %v689_v34 = vadd.f32 %v3191_v17, %v665_v56 }
 0x179   : > { %3045 = vmatmul.msk.bf16.gmra.mxu3 %vm1058_vm15, %v3951_v47  ;;  %v1113_v6 = vpop.f32.mrf.mxu1 }
 0x17a   : > { %v1187_v58 = vpop.f32.mrf.mxu2  ;;  %v4430_v53 = vmax.f32 %v688_v24, 0.0  ;;  %v4432_v0 = vmax.f32 %v689_v34, 0.0 }
 0x17b   : > { %v1188_v26 = vadd.f32 %v1187_v58, %v1111_v29  ;;  %v641_v29 = vpop.f32.mrf.mxu0 }
 0x17c   : > { %v1367_v5 = vpop.f32.mrf.mxu3  ;;  %v731_v45 = vrot.slane %v4430_v53, 7  ;;  %v741_v4 = vrot.slane %v4432_v0, 7  ;;  %v772_v35 = vrot.slane %v4430_v53, 1  ;;  %v782_v48 = vrot.slane %v4432_v0, 1 }
 0x17d   : > { %v4425_v2 = vadd.f32 %v1367_v5, %v1188_v26  ;;  %v667_v51 = vmul.f32 %v3190_v61, %v641_v29 }
 0x17e   : > { %v4451_v20 = vsel %vm4970_vm6, %v731_v45, %v741_v4  ;;  %v4478_v26 = vsel %vm784_vm11, %v772_v35, %v782_v48  ;;  %v4482_v5 = vsel %vm784_vm11, %v782_v48, %v772_v35  ;;  %vm1423_vm6 = vcmp.lt.s32.totalorder %v4129_v42, 16 }
 0x17f   : > { %v2103_v22 = vsel %vm4445_vm3, %v4451_v20, 0.0  ;;  %v691_v34 = vadd.f32 %v3191_v17, %v667_v51 }
 0x181   : > { %v1116_v47 = vpop.f32.mrf.mxu1 }
 0x182   : > { %v1189_v18 = vpop.f32.mrf.mxu2 }
 0x183   : > { %v1190_v33 = vadd.f32 %v1189_v18, %v1113_v6  ;;  %v666_v6 = vmul.f32 %v3190_v61, %v639_v43  ;;  %v2438_v61 = vsel %vm4445_vm3, %v4478_v26, 0.0 }
 0x184   : > { %v1369_v14 = vpop.f32.mrf.mxu3  ;;  %3028 = vmatmul.msk.bf16.gmra.mxu1 %vm1058_vm15, %v4088_v15 }
 0x185   : > { %v4436_v41 = vadd.f32 %v1369_v14, %v1190_v33  ;;  %v690_v24 = vadd.f32 %v3191_v17, %v666_v6  ;;  %v4501_v33 = vmax.f32 %v691_v34, 0.0  ;;  %v4503_v14 = vpop.f32.mrf.mxu0 }
 0x187   : > { %3037 = vmatmul.msk.bf16.gmra.mxu2 %vm1058_vm15, %v4017_v30  ;;  %v4455_v30 = vsel %vm4971_vm0, %v741_v4, %v731_v45  ;;  %vm4536_vm0 = vmand %vm1415_vm12, %vm1423_vm6 }
 0x189   : > { %3046 = vmatmul.msk.bf16.gmra.mxu3 %vm1058_vm15, %v4113_v23  ;;  %v1118_v16 = vpop.f32.mrf.mxu1  ;;  %v2102_v23 = vsel %vm2046_vm9, %v4455_v30, 0.0  ;;  %vm1462_vm9 = vmand %vm4536_vm0, %vm839_vm13 }
 0x18a   : > { %v1192_v27 = vpop.f32.mrf.mxu2  ;;  %v2111_v28 = vpack.c.bf16 %v2103_v22, %v2102_v23 }
 0x18b   : > { %v1193_v32 = vadd.f32 %v1192_v27, %v1116_v47  ;;  %v2439_v47 = vsel %vm2397_vm7, %v4482_v5, 0.0  ;;  %vm1843_vm7 = vmand %vm4536_vm0, %vm1237_vm14 }
 0x18c   : > { %v1372_v13 = vpop.f32.mrf.mxu3  ;;  %3057 = vmatmul.msk.bf16.gmra.mxu0 %vm1058_vm15, %v2111_v28  ;;  %v4497_v18 = vpack.c.bf16 %v2439_v47, %v2438_v61 }
 0x18d   : > { %v4465_v59 = vadd.f32 %v1372_v13, %v1193_v32  ;;  %v1098_v48 = vpop.f32.mrf.mxu0 }
 0x191   : > { %v1121_v52 = vpop.f32.mrf.mxu1 }
 0x192   : > { %v1194_v58 = vpop.f32.mrf.mxu2 }
 0x193   : > { %v4470_v55 = vadd.f32 %v1194_v58, %v1118_v16 }
 0x194   : > { %v4472_v56 = vpop.f32.mrf.mxu3  ;;  %3029 = vmatmul.msk.bf16.gmra.mxu1 %vm1058_vm15, %v4232_v11  ;;  %v2000_v11 = vadd.s32 1, %v4129_v42  ;;  %v1526_v42 = vsel %vm1462_vm9, %v4455_v30, 0.0  ;;  %v1709_v30 = vsel %vm4536_vm0, %v4432_v0, 0.0 }
 0x195   : > { %v1401_v50 = vadd.f32 %v4472_v56, %v4470_v55 }
 0x196   : > { %vm2007_vm2 = vcmp.ge.s32.totalorder %v2000_v11, 0  ;;  %vm2014_vm4 = vcmp.lt.s32.totalorder %v2000_v11, 16  ;;  %v1172_v11 = vpop.f32.mrf.mxu0 }
 0x197   : > { %3038 = vmatmul.msk.bf16.gmra.mxu2 %vm1058_vm15, %v4163_v7  ;;  %v4499_v7 = vmax.f32 %v690_v24, 0.0  ;;  %vm4509_vm8 = vmand %vm2007_vm2, %vm2014_vm4  ;;  %v1173_v34 = vadd.f32 %v1172_v11, %v4503_v14 }
 0x198   : > { %vm2048_vm1 = vmand %vm4509_vm8, %vm839_vm13  ;;  %vm4978_vm13 = vcmask 1041408  }
 0x199   : > { %3047 = vmatmul.msk.bf16.gmra.mxu3 %vm1058_vm15, %v4252_v10  ;;  %v1123_v17 = vpop.f32.mrf.mxu1  ;;  %v732_v16 = vrot.slane %v4499_v7, 7  ;;  %v742_v10 = vrot.slane %v4501_v33, 7  ;;  %vm2399_vm2 = vmand %vm4509_vm8, %vm1237_vm14 }
 0x19a   : > { %v1197_v43 = vpop.f32.mrf.mxu2 }
 0x19b   : > { %v1198_v45 = vadd.f32 %v1197_v43, %v1121_v52  ;;  %v753_v23 = vsel %vm4974_vm10, %v732_v16, %v742_v10  ;;  %v763_v22 = vsel %vm4975_vm5, %v742_v10, %v732_v16 }
 0x19c   : > { %v1377_v4 = vpop.f32.mrf.mxu3  ;;  %v2104_v29 = vsel %vm2048_vm1, %v763_v22, 0.0  ;;  %v2105_v35 = vsel %vm4509_vm8, %v753_v23, 0.0 }
 0x19d   : > { %v4505_v54 = vadd.f32 %v1377_v4, %v1198_v45  ;;  %v2112_v6 = vpack.c.bf16 %v2105_v35, %v2104_v29  ;;  %v1891_v4 = vsel %vm1843_vm7, %v4482_v5, 0.0 }
 0x19f   : > { %3058 = vmatmul.msk.bf16.gmra.mxu0 %vm1058_vm15, %v2112_v6  ;;  %v2636_v6 = vld [vmem:[%s4844_s7] sm:$0x3] }
 0x1a1   : > { %v1126_v32 = vpop.f32.mrf.mxu1 }
 0x1a2   : > { %v1199_v13 = vpop.f32.mrf.mxu2 }
 0x1a3   : > { %v4521_v28 = vadd.f32 %v1199_v13, %v1123_v17  ;;  %v1708_v17 = vsel %vm4536_vm0, %v4430_v53, 0.0 }
 0x1a4   : > { %v4525_v52 = vpop.f32.mrf.mxu3  ;;  %3030 = vmatmul.msk.bf16.gmra.mxu1 %vm1058_vm15, %v4359_v40  ;;  %v1717_v16 = vpack.c.bf16 %v1709_v30, %v1708_v17 }
 0x1a7   : > { %3039 = vmatmul.msk.bf16.gmra.mxu2 %vm1058_vm15, %v4318_v62 }
 0x1a9   : > { %3048 = vmatmul.msk.bf16.gmra.mxu3 %vm1058_vm15, %v4370_v21  ;;  %v1128_v51 = vpop.f32.mrf.mxu1  ;;  %v1527_v21 = vsel %vm4536_vm0, %v4451_v20, 0.0  ;;  %v1890_v20 = vsel %vm4536_vm0, %v4478_v26, 0.0  ;;  %v2662_v26 = vsel %vm4978_vm13, %v2636_v6, 0 }
 0x1aa   : > { %v1202_v58 = vpop.f32.mrf.mxu2  ;;  %v1535_v49 = vpack.c.bf16 %v1527_v21, %v1526_v42  ;;  %v1899_v10 = vpack.c.bf16 %v1891_v4, %v1890_v20  ;;  %2671 = vmatpush.bf16.msra.mxu3 %v2662_v26 }
 0x1ab   : > { %v1203_v24 = vadd.f32 %v1202_v58, %v1126_v32  ;;  %v1174_v32 = vpop.f32.mrf.mxu0 }
 0x1ac   : > { %v1382_v40 = vpop.f32.mrf.mxu3  ;;  %v1175_v17 = vadd.f32 %v1174_v32, %v1098_v48 }
 0x1ad   : > { %v4544_v62 = vadd.f32 %v1382_v40, %v1203_v24 }
 0x1b1   : > { %v1131_v61 = vpop.f32.mrf.mxu1 }
 0x1b2   : > { %v1204_v47 = vpop.f32.mrf.mxu2 }
 0x1b3   : > { %v4560_v43 = vadd.f32 %v1204_v47, %v1128_v51  ;;  %v1352_v51 = vpop.f32.mrf.mxu0 }
 0x1b4   : > { %v4562_v45 = vpop.f32.mrf.mxu3  ;;  %3031 = vmatmul.msk.bf16.gmra.mxu1 %vm1058_vm15, %v1535_v49  ;;  %v1392_v40 = vadd.f32 %v1352_v51, %v1173_v34 }
 0x1b7   : > { %3040 = vmatmul.msk.bf16.gmra.mxu2 %vm1058_vm15, %v1717_v16 }
 0x1b9   : > { %3049 = vmatmul.msk.bf16.gmra.mxu3 %vm1058_vm15, %v1899_v10  ;;  %v1133_v13 = vpop.f32.mrf.mxu1 }
 0x1ba   : > { %v1207_v23 = vpop.f32.mrf.mxu2 }
 0x1bb   : > { %v1208_v22 = vadd.f32 %v1207_v23, %v1131_v61  ;;  %v1354_v49 = vpop.f32.mrf.mxu0 }
 0x1bc   : > { %v1387_v29 = vpop.f32.mrf.mxu3  ;;  %v1393_v30 = vadd.f32 %v1354_v49, %v1175_v17 }
 0x1bd   : > { %v4571_v35 = vadd.f32 %v1387_v29, %v1208_v22 }
 0x1c1   : > { %v1574_v5 = vpop.f32.mrf.mxu1 }
 0x1c2   : > { %v1209_v58 = vpop.f32.mrf.mxu2  ;;  %v1614_v42 = vadd.f32 %v1574_v5, %v1392_v40  ;;  %v773_v5 = vrot.slane %v4499_v7, 1 }
 0x1c3   : > { %v4577_v24 = vadd.f32 %v1209_v58, %v1133_v13 }
 0x1c4   : > { %3060 = vmatmul.msk.bf16.vlgmr.msra.gmra.mxu1 %vm1058_vm15, %v3594_v9  ;;  %v1389_v55 = vpop.f32.mrf.mxu3 }
 0x1c7   : > { %3069 = vmatmul.msk.bf16.vlgmr.msra.gmra.mxu2 %vm1058_vm15, %v3674_v44 }
 0x1c9   : > { %v1576_v21 = vpop.f32.mrf.mxu1 }
 0x1ca   : > { %v1756_v61 = vpop.f32.mrf.mxu2  ;;  %v1615_v20 = vadd.f32 %v1576_v21, %v1393_v30 }
 0x1cb   : > { %v4584_v47 = vadd.f32 %v1756_v61, %v1614_v42 }
 0x1d1   : > { %v1579_v4 = vpop.f32.mrf.mxu1 }
 0x1d2   : > { %v1616_v16 = vadd.f32 %v1579_v4, %v4402_v1  ;;  %v1758_v10 = vpop.f32.mrf.mxu2 }
 0x1d3   : > { %v4587_v9 = vadd.f32 %v1758_v10, %v1615_v20 }
 0x1d4   : > { %3061 = vmatmul.msk.bf16.gmra.mxu1 %vm1058_vm15, %v3819_v57 }
 0x1d7   : > { %3070 = vmatmul.msk.bf16.gmra.mxu2 %vm1058_vm15, %v3839_v63 }
 0x1d9   : > { %v1581_v44 = vpop.f32.mrf.mxu1 }
 0x1da   : > { %v1617_v14 = vadd.f32 %v1581_v44, %v4406_v12  ;;  %v1761_v11 = vpop.f32.mrf.mxu2 }
 0x1db   : > { %v4594_v13 = vadd.f32 %v1761_v11, %v1616_v16 }
 0x1e1   : > { %v1584_v48 = vpop.f32.mrf.mxu1 }
 0x1e2   : > { %v1618_v32 = vadd.f32 %v1584_v48, %v4412_v31  ;;  %v1763_v23 = vpop.f32.mrf.mxu2 }
 0x1e3   : > { %v4597_v1 = vadd.f32 %v1763_v23, %v1617_v14 }
 0x1e4   : > { %3062 = vmatmul.msk.bf16.gmra.mxu1 %vm1058_vm15, %v3966_v36  ;;  %v2272_v36 = vsel %vm4509_vm8, %v4499_v7, 0.0 }
 0x1e7   : > { %3071 = vmatmul.msk.bf16.gmra.mxu2 %vm1058_vm15, %v3986_v8  ;;  %v783_v8 = vrot.slane %v4501_v33, 1 }
 0x1e9   : > { %v1586_v57 = vpop.f32.mrf.mxu1  ;;  %v794_v51 = vsel %vm784_vm11, %v773_v5, %v783_v8  ;;  %v804_v58 = vsel %vm784_vm11, %v783_v8, %v773_v5  ;;  %vm4979_vm11 = vcmask 130048  }
 0x1ea   : > { %v1619_v63 = vadd.f32 %v1586_v57, %v4416_v38  ;;  %v1766_v22 = vpop.f32.mrf.mxu2  ;;  %v2273_v38 = vsel %vm4509_vm8, %v4501_v33, 0.0  ;;  %v2440_v33 = vsel %vm4509_vm8, %v794_v51, 0.0  ;;  %vm4980_vm14 = vmmov %vm4979_vm11 }
 0x1eb   : > { %v4604_v12 = vadd.f32 %v1766_v22, %v1618_v32  ;;  %v2148_v32 = vpop.f32.mrf.mxu0 }
 0x1f1   : > { %v1589_v29 = vpop.f32.mrf.mxu1 }
 0x1f2   : > { %v1620_v6 = vadd.f32 %v1589_v29, %v4425_v2  ;;  %v1768_v26 = vpop.f32.mrf.mxu2  ;;  %v2280_v2 = vpack.c.bf16 %v2273_v38, %v2272_v36 }
 0x1f3   : > { %v4607_v31 = vadd.f32 %v1768_v26, %v1619_v63 }
 0x1f4   : > { %3063 = vmatmul.msk.bf16.gmra.mxu1 %vm1058_vm15, %v4102_v19  ;;  %v2441_v19 = vsel %vm2399_vm2, %v804_v58, 0.0 }
 0x1f5   : > { %v2448_v40 = vpack.c.bf16 %v2441_v19, %v2440_v33 }
 0x1f7   : > { %3072 = vmatmul.msk.bf16.gmra.mxu2 %vm1058_vm15, %v4118_v25 }
 0x1f9   : > { %v1591_v7 = vpop.f32.mrf.mxu1 }
 0x1fa   : > { %v1621_v34 = vadd.f32 %v1591_v7, %v4436_v41  ;;  %v1771_v25 = vpop.f32.mrf.mxu2 }
 0x1fb   : > { %v4632_v42 = vadd.f32 %v1771_v25, %v1620_v6  ;;  %v2150_v6 = vpop.f32.mrf.mxu0 }
 0x201   : > { %v1594_v21 = vpop.f32.mrf.mxu1 }
 0x202   : > { %v1622_v37 = vadd.f32 %v1594_v21, %v4465_v59  ;;  %v1773_v61 = vpop.f32.mrf.mxu2 }
 0x203   : > { %v4635_v49 = vadd.f32 %v1773_v61, %v1621_v34  ;;  %v2153_v38 = vpop.f32.mrf.mxu0  ;;  %v4687_v61 = vld [vmem:[%s4842_s5] ss:$0 sm:$0xff] }
 0x204   : > { %3064 = vmatmul.msk.bf16.gmra.mxu1 %vm1058_vm15, %v4236_v3  ;;  %v1403_v3 = vadd.f32 %v4525_v52, %v4521_v28  ;;  %v1938_v52 = vpop.f32.mrf.mxu3 }
 0x205   : > { %v1978_v33 = vadd.f32 %v1938_v52, %v4584_v47  ;;  %v4693_v47 = vld [vmem:[%s4843_s6] ss:$0 sm:$0xff] }
 0x207   : > { %3073 = vmatmul.msk.bf16.gmra.mxu2 %vm1058_vm15, %v4266_v39 }
 0x209   : > { %v1596_v41 = vpop.f32.mrf.mxu1 }
 0x20a   : > { %v1623_v27 = vadd.f32 %v1596_v41, %v1401_v50  ;;  %v1776_v17 = vpop.f32.mrf.mxu2 }
 0x20b   : > { %v4643_v30 = vadd.f32 %v1776_v17, %v1622_v37  ;;  %v2155_v19 = vpop.f32.mrf.mxu0 }
 0x211   : > { %v1599_v20 = vpop.f32.mrf.mxu1 }
 0x212   : > { %v1624_v59 = vadd.f32 %v1599_v20, %v4505_v54  ;;  %v1778_v4 = vpop.f32.mrf.mxu2  ;;  %v2270_v54 = vsel %vm4445_vm3, %v4430_v53, 0.0  ;;  %v1405_v53 = vadd.f32 %v4562_v45, %v4560_v43 }
 0x213   : > { %v4646_v16 = vadd.f32 %v1778_v4, %v1623_v27  ;;  %v2158_v41 = vpop.f32.mrf.mxu0 }
 0x214   : > { %3065 = vmatmul.msk.bf16.gmra.mxu1 %vm1058_vm15, %v4365_v46  ;;  %v2271_v46 = vsel %vm4445_vm3, %v4432_v0, 0.0  ;;  %vm4982_vm3 = vmmov %vm4979_vm11 }
 0x215   : > { %v2279_v48 = vpack.c.bf16 %v2271_v46, %v2270_v54  ;;  %vm4983_vm4 = vmmov %vm4982_vm3 }
 0x216   : > { %vm4984_vm8 = vmmov %vm4982_vm3 }
 0x217   : > { %3074 = vmatmul.msk.bf16.gmra.mxu2 %vm1058_vm15, %v4372_v60  ;;  %vm4985_vm10 = vmmov %vm4982_vm3 }
 0x218   : > { %vm4986_vm5 = vmmov %vm4982_vm3 }
 0x219   : > { %v1601_v39 = vpop.f32.mrf.mxu1  ;;  %vm4987_vm1 = vmmov %vm4982_vm3 }
 0x21a   : > { %v1625_v56 = vadd.f32 %v1601_v39, %v1403_v3  ;;  %v1781_v10 = vpop.f32.mrf.mxu2  ;;  %vm4988_vm12 = vmmov %vm4987_vm1 }
 0x21b   : > { %v4654_v44 = vadd.f32 %v1781_v10, %v1624_v59  ;;  %vm4989_vm6 = vmmov %vm4987_vm1 }
 0x21c   : > { %vm4990_vm0 = vmmov %vm4987_vm1 }
 0x21d   : > { %vm4991_vm9 = vmmov %vm4990_vm0 }
 0x21e   : > { %vm4992_vm7 = vmmov %vm4990_vm0 }
 0x21f   : > { %vm4993_vm13 = vmmov %vm4990_vm0 }
 0x220   : > { %vm4994_vm2 = vmmov %vm4990_vm0 }
 0x221   : > { %v1604_v14 = vpop.f32.mrf.mxu1 }
 0x222   : > { %v1626_v60 = vadd.f32 %v1604_v14, %v4544_v62  ;;  %v1783_v11 = vpop.f32.mrf.mxu2  ;;  %v1940_v62 = vpop.f32.mrf.mxu3 }
 0x223   : > { %v4663_v28 = vadd.f32 %v1783_v11, %v1625_v56  ;;  %v2160_v11 = vpop.f32.mrf.mxu0 }
 0x224   : > { %3066 = vmatmul.msk.bf16.gmra.mxu1 %vm1058_vm15, %v2279_v48 }
 0x227   : > { %3075 = vmatmul.msk.bf16.gmra.mxu2 %vm1058_vm15, %v4497_v18  ;;  %v1407_v18 = vadd.f32 %v1389_v55, %v4577_v24  ;;  %v1979_v24 = vadd.f32 %v1940_v62, %v4587_v9 }
 0x229   : > { %v1606_v23 = vpop.f32.mrf.mxu1  ;;  %v2189_v50 = vadd.f32 %v2150_v6, %v1979_v24 }
 0x22a   : > { %v1627_v15 = vadd.f32 %v1606_v23, %v1405_v53  ;;  %v1786_v0 = vpop.f32.mrf.mxu2  ;;  %v1943_v43 = vpop.f32.mrf.mxu3 }
 0x22b   : > { %v4670_v57 = vadd.f32 %v1786_v0, %v1626_v60  ;;  %v1980_v4 = vadd.f32 %v1943_v43, %v4594_v13 }
 0x22d   : > { %v2190_v54 = vadd.f32 %v2153_v38, %v1980_v4 }
 0x231   : > { %v1609_v63 = vpop.f32.mrf.mxu1 }
 0x232   : > { %v1628_v22 = vadd.f32 %v1609_v63, %v4571_v35  ;;  %v1788_v29 = vpop.f32.mrf.mxu2  ;;  %v1945_v58 = vpop.f32.mrf.mxu3 }
 0x233   : > { %v4673_v26 = vadd.f32 %v1788_v29, %v1627_v15  ;;  %v1981_v48 = vadd.f32 %v1945_v58, %v4597_v1  ;;  %v2163_v29 = vpop.f32.mrf.mxu0 }
 0x234   : > { %3067 = vmatmul.msk.bf16.gmra.mxu1 %vm1058_vm15, %v2280_v2  ;;  %v2188_v2 = vadd.f32 %v2148_v32, %v1978_v33 }
 0x235   : > { %v2191_v13 = vadd.f32 %v2155_v19, %v1981_v48 }
 0x237   : > { %3076 = vmatmul.msk.bf16.gmra.mxu2 %vm1058_vm15, %v2448_v40 }
 0x239   : > { %v1611_v45 = vpop.f32.mrf.mxu1 }
 0x23a   : > { %v1629_v5 = vadd.f32 %v1611_v45, %v1407_v18  ;;  %v1791_v36 = vpop.f32.mrf.mxu2  ;;  %v1948_v21 = vpop.f32.mrf.mxu3 }
 0x23b   : > { %v4678_v8 = vadd.f32 %v1791_v36, %v1628_v22  ;;  %v1982_v6 = vadd.f32 %v1948_v21, %v4604_v12  ;;  %v2165_v12 = vpop.f32.mrf.mxu0 }
 0x241   : > { %v2316_v51 = vpop.f32.mrf.mxu1 }
 0x242   : > { %v1793_v35 = vpop.f32.mrf.mxu2  ;;  %v2356_v40 = vadd.f32 %v2316_v51, %v2188_v2  ;;  %v1950_v55 = vpop.f32.mrf.mxu3 }
 0x243   : > { %v4680_v7 = vadd.f32 %v1793_v35, %v1629_v5  ;;  %v2192_v5 = vadd.f32 %v2158_v41, %v1982_v6  ;;  %v1983_v35 = vadd.f32 %v1950_v55, %v4607_v31 }
 0x249   : > { %v2318_v34 = vpop.f32.mrf.mxu1 }
 0x24a   : > { %v2484_v25 = vpop.f32.mrf.mxu2  ;;  %v2357_v27 = vadd.f32 %v2318_v34, %v2189_v50  ;;  %v1953_v23 = vpop.f32.mrf.mxu3  ;;  %v2193_v34 = vadd.f32 %v2160_v11, %v1983_v35 }
 0x24b   : > { %v2524_v37 = vadd.f32 %v2484_v25, %v2356_v40  ;;  %v1984_v41 = vadd.f32 %v1953_v23, %v4632_v42 }
 0x24d   : > { %v2544_v17 = vmul.f32 %v4687_v61, %v2524_v37 }
 0x24f   : > { %v2564_v3 = vadd.f32 %v4693_v47, %v2544_v17 }
 0x251   : > { %v2321_v20 = vpop.f32.mrf.mxu1  ;;  %v2580_v10 = vmax.f32 %v2564_v3, 0.0 }
 0x252   : > { %v2486_v9 = vpop.f32.mrf.mxu2  ;;  %v2358_v52 = vadd.f32 %v2321_v20, %v2190_v54  ;;  %v1955_v51 = vpop.f32.mrf.mxu3 }
 0x253   : > { %v2525_v59 = vadd.f32 %v2486_v9, %v2357_v27  ;;  %v2168_v20 = vpop.f32.mrf.mxu0  ;;  %v1985_v55 = vadd.f32 %v1955_v51, %v4635_v49 }
 0x255   : > { %v2545_v39 = vmul.f32 %v4687_v61, %v2525_v59  ;;  %v2194_v59 = vadd.f32 %v2163_v29, %v1984_v41 }
 0x257   : > { %v2565_v56 = vadd.f32 %v4693_v47, %v2545_v39 }
 0x259   : > { %v2581_v46 = vmax.f32 %v2565_v56, 0.0  ;;  %v2323_v14 = vpop.f32.mrf.mxu1 }
 0x25a   : > { %v2489_v60 = vpop.f32.mrf.mxu2  ;;  %v2359_v15 = vadd.f32 %v2323_v14, %v2191_v13  ;;  %v1958_v50 = vpop.f32.mrf.mxu3 }
 0x25b   : > { %v2596_v53 = vpack.c.bf16 %v2581_v46, %v2580_v10  ;;  %v2526_v32 = vadd.f32 %v2489_v60, %v2358_v52  ;;  %v2195_v46 = vadd.f32 %v2165_v12, %v1985_v55  ;;  %v2170_v52 = vpop.f32.mrf.mxu0 }
 0x25d   : > { %3077 = vmatmul.msk.bf16.vlgmr.msra.gmra.mxu3 %vm1058_vm15, %v2596_v53  ;;  %v2546_v0 = vmul.f32 %v4687_v61, %v2526_v32  ;;  %v1986_v32 = vadd.f32 %v1958_v50, %v4643_v30 }
 0x25f   : > { %v2566_v18 = vadd.f32 %v4693_v47, %v2546_v0 }
 0x261   : > { %v2326_v62 = vpop.f32.mrf.mxu1  ;;  %v2582_v45 = vmax.f32 %v2566_v18, 0.0 }
 0x262   : > { %v2491_v63 = vpop.f32.mrf.mxu2  ;;  %v2360_v33 = vadd.f32 %v2326_v62, %v2192_v5  ;;  %v1960_v42 = vpop.f32.mrf.mxu3  ;;  %v2196_v62 = vadd.f32 %v2168_v20, %v1986_v32 }
 0x263   : > { %v2527_v22 = vadd.f32 %v2491_v63, %v2359_v15  ;;  %v1987_v6 = vadd.f32 %v1960_v42, %v4646_v16 }
 0x265   : > { %v2547_v1 = vmul.f32 %v4687_v61, %v2527_v22  ;;  %v2197_v30 = vadd.f32 %v2170_v52, %v1987_v6 }
 0x267   : > { %v2567_v43 = vadd.f32 %v4693_v47, %v2547_v1 }
 0x269   : > { %v2583_v36 = vmax.f32 %v2567_v43, 0.0  ;;  %v2328_v38 = vpop.f32.mrf.mxu1  ;;  %v2173_v43 = vpop.f32.mrf.mxu0 }
 0x26a   : > { %v2494_v58 = vpop.f32.mrf.mxu2  ;;  %v2361_v25 = vadd.f32 %v2328_v38, %v2193_v34  ;;  %v1963_v15 = vpop.f32.mrf.mxu3 }
 0x26b   : > { %v2597_v19 = vpack.c.bf16 %v2583_v36, %v2582_v45  ;;  %v2528_v2 = vadd.f32 %v2494_v58, %v2360_v33  ;;  %v1988_v33 = vadd.f32 %v1963_v15, %v4654_v44 }
 0x26d   : > { %3078 = vmatmul.msk.bf16.gmra.mxu3 %vm1058_vm15, %v2597_v19  ;;  %v2548_v24 = vmul.f32 %v4687_v61, %v2528_v2 }
 0x26f   : > { %v2568_v27 = vadd.f32 %v4693_v47, %v2548_v24 }
 0x271   : > { %v2331_v40 = vpop.f32.mrf.mxu1  ;;  %v2584_v9 = vmax.f32 %v2568_v27, 0.0  ;;  %v2175_v2 = vpop.f32.mrf.mxu0 }
 0x272   : > { %v2496_v21 = vpop.f32.mrf.mxu2  ;;  %v2362_v56 = vadd.f32 %v2331_v40, %v2194_v59  ;;  %v1965_v51 = vpop.f32.mrf.mxu3 }
 0x273   : > { %v2529_v37 = vadd.f32 %v2496_v21, %v2361_v25  ;;  %v2198_v25 = vadd.f32 %v2173_v43, %v1988_v33 }
 0x275   : > { %v2549_v31 = vmul.f32 %v4687_v61, %v2529_v37  ;;  %v1989_v37 = vadd.f32 %v1965_v51, %v4663_v28 }
 0x277   : > { %v2569_v17 = vadd.f32 %v4693_v47, %v2549_v31 }
 0x279   : > { %v2585_v4 = vmax.f32 %v2569_v17, 0.0  ;;  %v2333_v3 = vpop.f32.mrf.mxu1  ;;  %v2178_v44 = vpop.f32.mrf.mxu0  ;;  %v2199_v17 = vadd.f32 %v2175_v2, %v1989_v37  ;;  %v3103_v37 = vld [vmem:[#allocation2 + $0x38] sm:$0xff]  }
 0x27a   : > { %v2499_v39 = vpop.f32.mrf.mxu2  ;;  %v2363_v14 = vadd.f32 %v2333_v3, %v2195_v46  ;;  %v1968_v27 = vpop.f32.mrf.mxu3 }
 0x27b   : > { %v2598_v10 = vpack.c.bf16 %v2585_v4, %v2584_v9  ;;  %v2530_v54 = vadd.f32 %v2499_v39, %v2362_v56  ;;  %v1990_v39 = vadd.f32 %v1968_v27, %v4670_v57 }
 0x27d   : > { %3079 = vmatmul.msk.bf16.gmra.mxu3 %vm1058_vm15, %v2598_v10  ;;  %v2550_v60 = vmul.f32 %v4687_v61, %v2530_v54  ;;  %v2200_v46 = vadd.f32 %v2178_v44, %v1990_v39 }
 0x27f   : > { %v2570_v13 = vadd.f32 %v4693_v47, %v2550_v60 }
 0x281   : > { %v2336_v11 = vpop.f32.mrf.mxu1  ;;  %v2586_v0 = vmax.f32 %v2570_v13, 0.0  ;;  %v2180_v54 = vpop.f32.mrf.mxu0 }
 0x282   : > { %v2501_v48 = vpop.f32.mrf.mxu2  ;;  %v2364_v18 = vadd.f32 %v2336_v11, %v2196_v62  ;;  %v1970_v56 = vpop.f32.mrf.mxu3 }
 0x283   : > { %v2531_v53 = vadd.f32 %v2501_v48, %v2363_v14  ;;  %v1991_v48 = vadd.f32 %v1970_v56, %v4673_v26 }
 0x285   : > { %v2551_v49 = vmul.f32 %v4687_v61, %v2531_v53  ;;  %v2201_v57 = vadd.f32 %v2180_v54, %v1991_v48 }
 0x287   : > { %v2571_v23 = vadd.f32 %v4693_v47, %v2551_v49 }
 0x289   : > { %v2587_v63 = vmax.f32 %v2571_v23, 0.0  ;;  %v2338_v22 = vpop.f32.mrf.mxu1  ;;  %v2183_v15 = vpop.f32.mrf.mxu0 }
 0x28a   : > { %v2504_v29 = vpop.f32.mrf.mxu2  ;;  %v2365_v5 = vadd.f32 %v2338_v22, %v2197_v30  ;;  %v1973_v13 = vpop.f32.mrf.mxu3 }
 0x28b   : > { %v2599_v1 = vpack.c.bf16 %v2587_v63, %v2586_v0  ;;  %v2532_v45 = vadd.f32 %v2504_v29, %v2364_v18  ;;  %v1992_v22 = vadd.f32 %v1973_v13, %v4678_v8 }
 0x28d   : > { %3080 = vmatmul.msk.bf16.gmra.mxu3 %vm1058_vm15, %v2599_v1  ;;  %v2552_v36 = vmul.f32 %v4687_v61, %v2532_v45  ;;  %v2202_v18 = vadd.f32 %v2183_v15, %v1992_v22 }
 0x28f   : > { %v2572_v19 = vadd.f32 %v4693_v47, %v2552_v36 }
 0x291   : > { %v2341_v38 = vpop.f32.mrf.mxu1  ;;  %v2588_v34 = vmax.f32 %v2572_v19, 0.0  ;;  %v2185_v51 = vpop.f32.mrf.mxu0 }
 0x292   : > { %v2506_v58 = vpop.f32.mrf.mxu2  ;;  %v2366_v50 = vadd.f32 %v2341_v38, %v2198_v25  ;;  %v1975_v45 = vpop.f32.mrf.mxu3 }
 0x293   : > { %v2533_v35 = vadd.f32 %v2506_v58, %v2365_v5  ;;  %v1993_v5 = vadd.f32 %v1975_v45, %v4680_v7 }
 0x295   : > { %v2553_v16 = vmul.f32 %v4687_v61, %v2533_v35  ;;  %v2203_v35 = vadd.f32 %v2185_v51, %v1993_v5 }
 0x297   : > { %v2573_v12 = vadd.f32 %v4693_v47, %v2553_v16 }
 0x299   : > { %v2589_v24 = vmax.f32 %v2573_v12, 0.0  ;;  %v2343_v40 = vpop.f32.mrf.mxu1 }
 0x29a   : > { %v2509_v21 = vpop.f32.mrf.mxu2  ;;  %v2367_v20 = vadd.f32 %v2343_v40, %v2199_v17 }
 0x29b   : > { %v2600_v41 = vpack.c.bf16 %v2589_v24, %v2588_v34  ;;  %v2534_v31 = vadd.f32 %v2509_v21, %v2366_v50  ;;  %v4751_v21 = vld [vmem:[%s4845_s8] ss:$0 sm:$0xff] }
 0x29c   : > { %v4756_v50 = vld [vmem:[%s4846_s9] ss:$0 sm:$0xff] }
 0x29d   : > { %3081 = vmatmul.msk.bf16.gmra.mxu3 %vm1058_vm15, %v2600_v41  ;;  %v2554_v9 = vmul.f32 %v4687_v61, %v2534_v31  ;;  %v3104_v41 = vunpack.c.l.bf16 %v3103_v37 }
 0x29f   : > { %v2574_v55 = vadd.f32 %v4693_v47, %v2554_v9 }
 0x2a1   : > { %v2346_v59 = vpop.f32.mrf.mxu1  ;;  %v2590_v42 = vmax.f32 %v2574_v55, 0.0 }
 0x2a2   : > { %v2511_v4 = vpop.f32.mrf.mxu2  ;;  %v2368_v52 = vadd.f32 %v2346_v59, %v2200_v46 }
 0x2a3   : > { %v2535_v3 = vadd.f32 %v2511_v4, %v2367_v20  ;;  %v3105_v20 = vunpack.c.h.bf16 %v3103_v37 }
 0x2a5   : > { %v2555_v28 = vmul.f32 %v4687_v61, %v2535_v3  ;;  %v3134_v3 = vld [vmem:[#allocation2 + $0x8] sm:$0xff]  }
 0x2a7   : > { %v2575_v10 = vadd.f32 %v4693_v47, %v2555_v28  ;;  %v3108_v28 = vunpack.c.l.bf16 %v3134_v3 }
 0x2a9   : > { %v2591_v14 = vmax.f32 %v2575_v10, 0.0  ;;  %v2348_v60 = vpop.f32.mrf.mxu1 }
 0x2aa   : > { %v2514_v11 = vpop.f32.mrf.mxu2  ;;  %v2369_v49 = vadd.f32 %v2348_v60, %v2201_v57 }
 0x2ab   : > { %v2601_v53 = vpack.c.bf16 %v2591_v14, %v2590_v42  ;;  %v2536_v32 = vadd.f32 %v2514_v11, %v2368_v52  ;;  %v3109_v14 = vunpack.c.h.bf16 %v3134_v3  ;;  %v3135_v52 = vld [vmem:[#allocation2 + $0x20] sm:$0xff]  }
 0x2ac   : > { %v3112_v57 = vunpack.c.l.bf16 %v3135_v52 }
 0x2ad   : > { %3082 = vmatmul.msk.bf16.gmra.mxu3 %vm1058_vm15, %v2601_v53  ;;  %v2556_v23 = vmul.f32 %v4687_v61, %v2536_v32 }
 0x2af   : > { %v2576_v29 = vadd.f32 %v4693_v47, %v2556_v23 }
 0x2b1   : > { %v2351_v63 = vpop.f32.mrf.mxu1  ;;  %v2592_v1 = vmax.f32 %v2576_v29, 0.0 }
 0x2b2   : > { %v2516_v0 = vpop.f32.mrf.mxu2  ;;  %v2370_v36 = vadd.f32 %v2351_v63, %v2202_v18 }
 0x2b3   : > { %v2537_v62 = vadd.f32 %v2516_v0, %v2369_v49 }
 0x2b5   : > { %v2557_v26 = vmul.f32 %v4687_v61, %v2537_v62  ;;  %v3113_v62 = vunpack.c.h.bf16 %v3135_v52 }
 0x2b7   : > { %v2577_v6 = vadd.f32 %v4693_v47, %v2557_v26  ;;  %v3136_v26 = vld [vmem:[#allocation2 + $0x18] sm:$0xff]  }
 0x2b9   : > { %v2593_v43 = vmax.f32 %v2577_v6, 0.0  ;;  %v2353_v8 = vpop.f32.mrf.mxu1 }
 0x2ba   : > { %v2519_v30 = vpop.f32.mrf.mxu2  ;;  %v2371_v33 = vadd.f32 %v2353_v8, %v2203_v35  ;;  %v3137_v35 = vld [vmem:[#allocation2 + $0x48] sm:$0xff]  }
 0x2bb   : > { %v2602_v38 = vpack.c.bf16 %v2593_v43, %v2592_v1  ;;  %v2538_v58 = vadd.f32 %v2519_v30, %v2370_v36  ;;  %v3116_v1 = vunpack.c.l.bf16 %v3136_v26 }
 0x2bd   : > { %3083 = vmatmul.msk.bf16.gmra.mxu3 %vm1058_vm15, %v2602_v38  ;;  %v2558_v19 = vmul.f32 %v4687_v61, %v2538_v58  ;;  %v3117_v38 = vunpack.c.h.bf16 %v3136_v26 }
 0x2bf   : > { %v2578_v12 = vadd.f32 %v4693_v47, %v2558_v19 }
 0x2c1   : > { %v2594_v25 = vmax.f32 %v2578_v12, 0.0 }
 0x2c2   : > { %v2521_v16 = vpop.f32.mrf.mxu2 }
 0x2c3   : > { %v2539_v2 = vadd.f32 %v2521_v16, %v2371_v33  ;;  %v3120_v16 = vunpack.c.l.bf16 %v3137_v35 }
 0x2c5   : > { %v2559_v34 = vmul.f32 %v4687_v61, %v2539_v2 }
 0x2c7   : > { %v2579_v7 = vadd.f32 %v4693_v47, %v2559_v34 }
 0x2c9   : > { %v2595_v24 = vmax.f32 %v2579_v7, 0.0 }
 0x2cb   : > { %v2603_v40 = vpack.c.bf16 %v2595_v24, %v2594_v25  ;;  %v3121_v24 = vunpack.c.h.bf16 %v3137_v35 }
 0x2cd   : > { %3084 = vmatmul.msk.bf16.gmra.mxu3 %vm1058_vm15, %v2603_v40  ;;  %vm4981_vm15 = vmmov %vm4979_vm11 }
 0x2e0   : > { %v2673_v61 = vpop.f32.mrf.mxu3 }
 0x2e1   : > { %v2717_v47 = vmul.f32 %v4751_v21, %v2673_v61 }
 0x2e3   : > { %v2737_v27 = vadd.f32 %v4756_v50, %v2717_v47 }
 0x2e5   : > { %v2753_v31 = vadd.f32 %v3104_v41, %v2737_v27  ;;  %v3138_v41 = vld [vmem:[#allocation2 + $0x30] sm:$0xff]  }
 0x2e7   : > { %v2769_v44 = vmax.f32 %v2753_v31, 0.0  ;;  %v3124_v31 = vunpack.c.l.bf16 %v3138_v41 }
 0x2e8   : > { %v2675_v17 = vpop.f32.mrf.mxu3 }
 0x2e9   : > { %2785 = vst.msk [vmem:[%s3340_s12] sm:$0xff] %vm4979_vm11, %v2769_v44  ;;  %v2718_v9 = vmul.f32 %v4751_v21, %v2675_v17 }
 0x2eb   : > { %v2738_v59 = vadd.f32 %v4756_v50, %v2718_v9 }
 0x2ed   : > { %v2754_v4 = vadd.f32 %v3105_v20, %v2738_v59 }
 0x2ef   : > { %v2770_v39 = vmax.f32 %v2754_v4, 0.0  ;;  %v3125_v4 = vunpack.c.h.bf16 %v3138_v41 }
 0x2f0   : > { %v2678_v55 = vpop.f32.mrf.mxu3 }
 0x2f1   : > { %2786 = vst.msk [vmem:[%s3340_s12 + $0x8] sm:$0xff] %vm4980_vm14, %v2770_v39  ;;  %v2719_v56 = vmul.f32 %v4751_v21, %v2678_v55 }
 0x2f3   : > { %v2739_v10 = vadd.f32 %v4756_v50, %v2719_v56 }
 0x2f5   : > { %v2755_v54 = vadd.f32 %v3108_v28, %v2739_v10  ;;  %v3139_v28 = vld [vmem:[#allocation2 + $0x10] sm:$0xff]  }
 0x2f7   : > { %v2771_v42 = vmax.f32 %v2755_v54, 0.0  ;;  %v3128_v54 = vunpack.c.l.bf16 %v3139_v28 }
 0x2f8   : > { %v2680_v46 = vpop.f32.mrf.mxu3 }
 0x2f9   : > { %2787 = vst.msk [vmem:[%s3340_s12 + $0x10] sm:$0xff] %vm4981_vm15, %v2771_v42  ;;  %v2720_v60 = vmul.f32 %v4751_v21, %v2680_v46 }
 0x2fb   : > { %v2740_v11 = vadd.f32 %v4756_v50, %v2720_v60 }
 0x2fd   : > { %v2756_v48 = vadd.f32 %v3109_v14, %v2740_v11 }
 0x2ff   : > { %v2772_v53 = vmax.f32 %v2756_v48, 0.0  ;;  %v3129_v48 = vunpack.c.h.bf16 %v3139_v28 }
 0x300   : > { %v2683_v32 = vpop.f32.mrf.mxu3 }
 0x301   : > { %2788 = vst.msk [vmem:[%s3340_s12 + $0x18] sm:$0xff] %vm4982_vm3, %v2772_v53  ;;  %v2721_v13 = vmul.f32 %v4751_v21, %v2683_v32 }
 0x303   : > { %v2741_v49 = vadd.f32 %v4756_v50, %v2721_v13 }
 0x305   : > { %v2757_v23 = vadd.f32 %v3112_v57, %v2741_v49  ;;  %v3140_v57 = vld [vmem:[#allocation2 + $0x28] sm:$0xff]  }
 0x307   : > { %v2773_v15 = vmax.f32 %v2757_v23, 0.0  ;;  %v3132_v23 = vunpack.c.l.bf16 %v3140_v57 }
 0x308   : > { %v2685_v0 = vpop.f32.mrf.mxu3 }
 0x309   : > { %2789 = vst.msk [vmem:[%s3340_s12 + $0x20] sm:$0xff] %vm4983_vm4, %v2773_v15  ;;  %v2722_v63 = vmul.f32 %v4751_v21, %v2685_v0 }
 0x30b   : > { %v2742_v22 = vadd.f32 %v4756_v50, %v2722_v63 }
 0x30d   : > { %v2758_v29 = vadd.f32 %v3113_v62, %v2742_v22 }
 0x30f   : > { %v2774_v6 = vmax.f32 %v2758_v29, 0.0  ;;  %v3133_v29 = vunpack.c.h.bf16 %v3140_v57 }
 0x310   : > { %v2688_v18 = vpop.f32.mrf.mxu3 }
 0x311   : > { %2790 = vst.msk [vmem:[%s3340_s12 + $0x28] sm:$0xff] %vm4984_vm8, %v2774_v6  ;;  %v2723_v43 = vmul.f32 %v4751_v21, %v2688_v18 }
 0x313   : > { %v2743_v45 = vadd.f32 %v4756_v50, %v2723_v43 }
 0x315   : > { %v2759_v30 = vadd.f32 %v3116_v1, %v2743_v45 }
 0x317   : > { %v2775_v5 = vmax.f32 %v2759_v30, 0.0 }
 0x318   : > { %v2690_v36 = vpop.f32.mrf.mxu3 }
 0x319   : > { %2791 = vst.msk [vmem:[%s3340_s12 + $0x30] sm:$0xff] %vm4985_vm10, %v2775_v5  ;;  %v2724_v51 = vmul.f32 %v4751_v21, %v2690_v36 }
 0x31b   : > { %v2744_v58 = vadd.f32 %v4756_v50, %v2724_v51 }
 0x31d   : > { %v2760_v8 = vadd.f32 %v3117_v38, %v2744_v58 }
 0x31f   : > { %v2776_v33 = vmax.f32 %v2760_v8, 0.0 }
 0x320   : > { %v2693_v19 = vpop.f32.mrf.mxu3 }
 0x321   : > { %2792 = vst.msk [vmem:[%s3340_s12 + $0x38] sm:$0xff] %vm4986_vm5, %v2776_v33  ;;  %v2725_v2 = vmul.f32 %v4751_v21, %v2693_v19 }
 0x323   : > { %v2745_v12 = vadd.f32 %v4756_v50, %v2725_v2 }
 0x325   : > { %v2761_v34 = vadd.f32 %v3120_v16, %v2745_v12 }
 0x327   : > { %v2777_v7 = vmax.f32 %v2761_v34, 0.0 }
 0x328   : > { %v2695_v25 = vpop.f32.mrf.mxu3 }
 0x329   : > { %2793 = vst.msk [vmem:[%s3340_s12 + $0x40] sm:$0xff] %vm4987_vm1, %v2777_v7  ;;  %v2726_v40 = vmul.f32 %v4751_v21, %v2695_v25 }
 0x32b   : > { %v2746_v37 = vadd.f32 %v4756_v50, %v2726_v40 }
 0x32d   : > { %v2762_v61 = vadd.f32 %v3121_v24, %v2746_v37 }
 0x32f   : > { %v2778_v47 = vmax.f32 %v2762_v61, 0.0 }
 0x330   : > { %v2698_v27 = vpop.f32.mrf.mxu3 }
 0x331   : > { %2794 = vst.msk [vmem:[%s3340_s12 + $0x48] sm:$0xff] %vm4988_vm12, %v2778_v47  ;;  %v2727_v44 = vmul.f32 %v4751_v21, %v2698_v27 }
 0x333   : > { %v2747_v17 = vadd.f32 %v4756_v50, %v2727_v44 }
 0x335   : > { %v2763_v20 = vadd.f32 %v3124_v31, %v2747_v17 }
 0x337   : > { %v2779_v9 = vmax.f32 %v2763_v20, 0.0 }
 0x338   : > { %v2700_v59 = vpop.f32.mrf.mxu3 }
 0x339   : > { %2795 = vst.msk [vmem:[%s3340_s12 + $0x50] sm:$0xff] %vm4989_vm6, %v2779_v9  ;;  %v2728_v3 = vmul.f32 %v4751_v21, %v2700_v59 }
 0x33b   : > { %v2748_v39 = vadd.f32 %v4756_v50, %v2728_v3 }
 0x33d   : > { %v2764_v55 = vadd.f32 %v3125_v4, %v2748_v39 }
 0x33f   : > { %v2780_v56 = vmax.f32 %v2764_v55, 0.0 }
 0x340   : > { %v2703_v10 = vpop.f32.mrf.mxu3 }
 0x341   : > { %2796 = vst.msk [vmem:[%s3340_s12 + $0x58] sm:$0xff] %vm4990_vm0, %v2780_v56  ;;  %v2729_v42 = vmul.f32 %v4751_v21, %v2703_v10 }
 0x343   : > { %v2749_v46 = vadd.f32 %v4756_v50, %v2729_v42 }
 0x345   : > { %v2765_v14 = vadd.f32 %v3128_v54, %v2749_v46 }
 0x347   : > { %v2781_v60 = vmax.f32 %v2765_v14, 0.0 }
 0x348   : > { %v2705_v11 = vpop.f32.mrf.mxu3 }
 0x349   : > { %2797 = vst.msk [vmem:[%s3340_s12 + $0x60] sm:$0xff] %vm4991_vm9, %v2781_v60  ;;  %v2730_v52 = vmul.f32 %v4751_v21, %v2705_v11 }
 0x34b   : > { %v2750_v53 = vadd.f32 %v4756_v50, %v2730_v52 }
 0x34d   : > { %v2766_v32 = vadd.f32 %v3129_v48, %v2750_v53 }
 0x34f   : > { %v2782_v13 = vmax.f32 %v2766_v32, 0.0 }
 0x350   : > { %v2708_v49 = vpop.f32.mrf.mxu3 }
 0x351   : > { %2798 = vst.msk [vmem:[%s3340_s12 + $0x68] sm:$0xff] %vm4992_vm7, %v2782_v13  ;;  %v2731_v15 = vmul.f32 %v4751_v21, %v2708_v49 }
 0x353   : > { %v2751_v0 = vadd.f32 %v4756_v50, %v2731_v15 }
 0x355   : > { %v2767_v62 = vadd.f32 %v3132_v23, %v2751_v0 }
 0x357   : > { %v2783_v63 = vmax.f32 %v2767_v62, 0.0 }
 0x358   : > { %v2710_v22 = vpop.f32.mrf.mxu3 }
 0x359   : > { %2799 = vst.msk [vmem:[%s3340_s12 + $0x70] sm:$0xff] %vm4993_vm13, %v2783_v63  ;;  %v2732_v26 = vmul.f32 %v4751_v21, %v2710_v22 }
 0x35b   : > { %v2752_v6 = vadd.f32 %v4756_v50, %v2732_v26 }
 0x35d   : > { %v2768_v18 = vadd.f32 %v3133_v29, %v2752_v6 }
 0x35f   : > { %v2784_v1 = vmax.f32 %v2768_v18, 0.0 }
 0x361   : > { %2800 = vst.msk [vmem:[%s3340_s12 + $0x78] sm:$0xff] %vm4994_vm2, %v2784_v1 }
 0x362 PF: > { %s20_s17 = sadd.s32 1, %s3236_s17   ;;  %s4995_s14 = sld [smem:[#allocation10_spill]] }
 0x363   : > { %p17_p9 = scmp.ge.s32.totalorder %s20_s17, 6   ;;  %s4996_s16 = sld [smem:[#allocation11_spill]] }
 0x364   : > { %s4997_s18 = sld [smem:[#allocation12_spill]]  ;;  %s4998_s13 = smov %s3228_s15 }
 0x366   :  { %19 = sbr.rel (!%p17_p9) target bundleno = 3 (0x3), region = 199 }
 0x369   : > { %s4999_s15 = smov %s4996_s16 }
 0x36a   : > { %s5000_s16 = smov %s4997_s18 }
 0x36b   :  { %2833 = vsyncmov [#allocation3] }
 0x36e   :  { %s2834_s12 = vpop.sfrf %2833 }
 0x36f   :  { %p3087_p10 = scmp.ne.s32.totalorder %s2834_s12, 0 }
 0x371   :  { %2838 = shalt.err (%p3087_p10)  }
 0x372   :  { %2840 = vsyncmov [#allocation3 + $0x1] }
 0x375   :  { %s2841_s25 = vpop.sfrf %2840 }
 0x376   :  { %p3088_p11 = scmp.ne.s32.totalorder %s2841_s25, 0 }
 0x378   :  { %2845 = shalt.err (%p3088_p11)  }
 0x379   :  { %2847 = vsyncmov [#allocation3 + $0x2] }
 0x37c   :  { %s2848_s27 = vpop.sfrf %2847 }
 0x37d   :  { %p3089_p12 = scmp.ne.s32.totalorder %s2848_s27, 0 }
 0x37f   :  { %2852 = shalt.err (%p3089_p12)  }

</bundles_post_ra>
